<compile_context>
chip_gen: v7x
topology: tpu7x:2x2x1
jax: 0.10.0
libtpu: 0.0.40
codegen_flags: <defaults>
</compile_context>

<pallas_src>
import math
from functools import partial

import jax
import jax.numpy as jnp
from jax.experimental import pallas as pl
from jax.experimental.pallas import tpu as pltpu


# --------------------------------------------------------------- kernel -----
def _decoder_layer_kernel(
    tgt_ref, mem_ref, sty_ref, wada_ref, bada_ref,
    saw_ref, sab_ref, sow_ref, sob_ref,
    cqw_ref, cqb_ref, ckw_ref, ckb_ref, cow_ref, cob_ref,
    f1w_ref, f1b_ref, f2w_ref, f2b_ref,
    o_ref, *, nhead, eps):
    D = tgt_ref.shape[-1]
    Dh = D // nhead
    scale = 1.0 / math.sqrt(Dh)

    def mha(q, k_all, v_all):
        """q: (T, D), k_all/v_all: (S, D) in head-concatenated layout."""
        outs = []
        for h in range(nhead):           # static Python loop, H is tiny
            lo, hi = h * Dh, (h + 1) * Dh
            qh = q[:, lo:hi]
            kh = k_all[:, lo:hi]
            vh = v_all[:, lo:hi]
            s = jax.lax.dot_general(qh, kh, (((1,), (1,)), ((), ())),
                                    preferred_element_type=jnp.float32) * scale
            m = jnp.max(s, axis=-1, keepdims=True)
            e = jnp.exp(s - m)
            denom = jnp.sum(e, axis=-1, keepdims=True)
            oh = jnp.dot(e, vh, preferred_element_type=jnp.float32)
            # deferred normalization: (T, Dh) multiply instead of (T, S) divide
            oh = oh * pl.reciprocal(denom, approx=False)
            outs.append(oh)
        return jnp.concatenate(outs, axis=-1)            # (T, D)

    def ada_ln(y, g, b):
        """gamma * LayerNorm(y) + beta; LN affine already folded into g/b."""
        mean = jnp.mean(y, axis=-1, keepdims=True)
        c = y - mean
        var = jnp.mean(c * c, axis=-1, keepdims=True)
        h = c * jax.lax.rsqrt(var + eps)
        return g * h + b

    x = tgt_ref[...].astype(jnp.float32)                 # (T, D)
    mem = mem_ref[...].astype(jnp.float32)               # (S, D)

    # one tiny matmul produces all six per-sample affine vectors:
    # columns [g1 | b1 | g2 | b2 | g3 | b3], each D wide
    gb = jnp.dot(sty_ref[...].astype(jnp.float32), wada_ref[...],
                 preferred_element_type=jnp.float32) + bada_ref[...]   # (1, 6D)

    # ---- self-attention + adanorm1 ----------------------------------------
    qkv = jnp.dot(x, saw_ref[...], preferred_element_type=jnp.float32) + sab_ref[...]
    sa = mha(qkv[:, :D], qkv[:, D:2 * D], qkv[:, 2 * D:])
    sa = jnp.dot(sa, sow_ref[...], preferred_element_type=jnp.float32) + sob_ref[...]
    x = ada_ln(x + sa, gb[:, 0:D], gb[:, D:2 * D])

    # ---- cross-attention + adanorm2 ----------------------------------------
    qc = jnp.dot(x, cqw_ref[...], preferred_element_type=jnp.float32) + cqb_ref[...]
    kvm = jnp.dot(mem, ckw_ref[...], preferred_element_type=jnp.float32) + ckb_ref[...]
    ca = mha(qc, kvm[:, :D], kvm[:, D:])
    ca = jnp.dot(ca, cow_ref[...], preferred_element_type=jnp.float32) + cob_ref[...]
    x = ada_ln(x + ca, gb[:, 2 * D:3 * D], gb[:, 3 * D:4 * D])

    # ---- feed-forward + adanorm3 --------------------------------------------
    hff = jnp.dot(x, f1w_ref[...], preferred_element_type=jnp.float32) + f1b_ref[...]
    hff = jax.nn.gelu(hff, approximate=True)
    ff = jnp.dot(hff, f2w_ref[...], preferred_element_type=jnp.float32) + f2b_ref[...]
    x = ada_ln(x + ff, gb[:, 4 * D:5 * D], gb[:, 5 * D:])

    o_ref[...] = x.astype(o_ref.dtype)


# -------------------------------------------------- style-affine folding ----
def _fold_ada(params):
    """Fold each AdaLayerNorm's inner LayerNorm affine into its style2scale
    projection and concatenate all three into one (style_dim, 6D) weight."""
    cols_w, cols_b = [], []
    for name in ("ada1", "ada2", "ada3"):
        p = params[name]
        D = p["ln_w"].shape[0]
        wg, wb = p["s2s_w"][:, :D], p["s2s_w"][:, D:]
        bg, bb = p["s2s_b"][:D], p["s2s_b"][D:]
        cols_w.append(wg * p["ln_w"])                    # gamma_eff weight
        cols_w.append(wg * p["ln_b"] + wb)               # beta_eff weight
        cols_b.append(bg * p["ln_w"])
        cols_b.append(bg * p["ln_b"] + bb)
    w_ada = jnp.concatenate(cols_w, axis=-1)             # (STYLE, 6D)
    b_ada = jnp.concatenate(cols_b, axis=-1)[None, :]    # (1, 6D)
    return w_ada, b_ada


# --------------------------------------------------------- full forward -----
def decoder_layer_forward(tgt, memory, style, params, *, nhead, eps=1e-5):
    """Eval-mode FastTalkTransformerDecoderLayerWithADAIN.forward
    (norm_first=False path; all dropouts are identity in eval).
    One fused pallas_call, grid=(B,)."""
    B, T, D = tgt.shape
    S = memory.shape[1]
    STYLE = style.shape[1]
    assert D % nhead == 0
    FF = params["ff1_w"].shape[1]

    w_ada, b_ada = _fold_ada(params)
    sty3 = style.reshape(B, 1, STYLE)

    def b2d(v):        # bias (N,) -> (1, N) so the block equals the full array
        return v.reshape(1, -1)

    def full2d(shape):
        return pl.BlockSpec(shape, lambda b: (0, 0))

    grid_spec = pltpu.PrefetchScalarGridSpec(
        num_scalar_prefetch=0,
        grid=(B,),
        in_specs=[
            pl.BlockSpec((None, T, D), lambda b: (b, 0, 0)),        # tgt
            pl.BlockSpec((None, S, D), lambda b: (b, 0, 0)),        # memory
            pl.BlockSpec((None, 1, STYLE), lambda b: (b, 0, 0)),    # style
            full2d((STYLE, 6 * D)),                                 # w_ada
            full2d((1, 6 * D)),                                     # b_ada
            full2d((D, 3 * D)), full2d((1, 3 * D)),                 # sa in-proj
            full2d((D, D)), full2d((1, D)),                         # sa out-proj
            full2d((D, D)), full2d((1, D)),                         # ca q-proj
            full2d((D, 2 * D)), full2d((1, 2 * D)),                 # ca kv-proj
            full2d((D, D)), full2d((1, D)),                         # ca out-proj
            full2d((D, FF)), full2d((1, FF)),                       # ff1
            full2d((FF, D)), full2d((1, D)),                        # ff2
        ],
        out_specs=pl.BlockSpec((None, T, D), lambda b: (b, 0, 0)),
    )

    return pl.pallas_call(
        partial(_decoder_layer_kernel, nhead=nhead, eps=eps),
        out_shape=jax.ShapeDtypeStruct((B, T, D), tgt.dtype),
        grid_spec=grid_spec,
        compiler_params=pltpu.CompilerParams(
            dimension_semantics=("parallel",)),
    )(tgt, memory, sty3, w_ada, b_ada,
      params["sa_in_w"], b2d(params["sa_in_b"]),
      params["sa_out_w"], b2d(params["sa_out_b"]),
      params["ca_q_w"], b2d(params["ca_q_b"]),
      params["ca_kv_w"], b2d(params["ca_kv_b"]),
      params["ca_out_w"], b2d(params["ca_out_b"]),
      params["ff1_w"], b2d(params["ff1_b"]),
      params["ff2_w"], b2d(params["ff2_b"]))


# ----------------------------------------------------- pure-JAX reference ---
def reference_forward(tgt, memory, style, params, *, nhead, eps=1e-5):
    B, T, D = tgt.shape
    S = memory.shape[1]
    H = nhead
    Dh = D // H

    def mha(q, k, v):
        L, Lk = q.shape[1], k.shape[1]
        qh = q.reshape(B, L, H, Dh).transpose(0, 2, 1, 3)
        kh = k.reshape(B, Lk, H, Dh).transpose(0, 2, 1, 3)
        vh = v.reshape(B, Lk, H, Dh).transpose(0, 2, 1, 3)
        s = jnp.einsum("bhtd,bhsd->bhts", qh, kh) / math.sqrt(Dh)
        p = jax.nn.softmax(s, axis=-1)
        o = jnp.einsum("bhts,bhsd->bhtd", p, vh)
        return o.transpose(0, 2, 1, 3).reshape(B, L, D)

    def ada_ln(x, p):
        mean = jnp.mean(x, axis=-1, keepdims=True)
        var = jnp.mean((x - mean) ** 2, axis=-1, keepdims=True)
        h = (x - mean) * jax.lax.rsqrt(var + eps) * p["ln_w"] + p["ln_b"]
        gb = style @ p["s2s_w"] + p["s2s_b"]
        gamma, beta = gb[:, :D], gb[:, D:]
        return gamma[:, None, :] * h + beta[:, None, :]

    qkv = tgt.reshape(B * T, D) @ params["sa_in_w"] + params["sa_in_b"]
    q, k, v = (qkv[:, :D].reshape(B, T, D), qkv[:, D:2 * D].reshape(B, T, D),
               qkv[:, 2 * D:].reshape(B, T, D))
    sa = (mha(q, k, v).reshape(B * T, D) @ params["sa_out_w"]
          + params["sa_out_b"]).reshape(B, T, D)
    x = ada_ln(tgt + sa, params["ada1"])

    qc = (x.reshape(B * T, D) @ params["ca_q_w"] + params["ca_q_b"]).reshape(B, T, D)
    kvm = memory.reshape(B * S, D) @ params["ca_kv_w"] + params["ca_kv_b"]
    km, vm = kvm[:, :D].reshape(B, S, D), kvm[:, D:].reshape(B, S, D)
    ca = (mha(qc, km, vm).reshape(B * T, D) @ params["ca_out_w"]
          + params["ca_out_b"]).reshape(B, T, D)
    x = ada_ln(x + ca, params["ada2"])

    h = jax.nn.gelu(x.reshape(B * T, D) @ params["ff1_w"] + params["ff1_b"],
                    approximate=True)
    ff = (h @ params["ff2_w"] + params["ff2_b"]).reshape(B, T, D)
    x = ada_ln(x + ff, params["ada3"])
    return x


# ------------------------------------------------------------ parameters ----
def init_params(key, d_model, style_dim, dff):
    D = d_model
    ks = jax.random.split(key, 20)

    def w(k, fan_in, shape):
        return jax.random.normal(k, shape, jnp.float32) / math.sqrt(fan_in)

    def b(k, shape):
        return 0.02 * jax.random.normal(k, shape, jnp.float32)

    def ada(k1, k2):
        return {
            "ln_w": jnp.ones((D,), jnp.float32),
            "ln_b": jnp.zeros((D,), jnp.float32),
            # torch init is zero weight / [1..1,0..0] bias; small random values
            # here so the style-conditioning path is numerically exercised.
            "s2s_w": 0.1 * jax.random.normal(k1, (style_dim, 2 * D), jnp.float32),
            "s2s_b": (jnp.concatenate([jnp.ones((D,)), jnp.zeros((D,))]).astype(jnp.float32)
                      + 0.05 * jax.random.normal(k2, (2 * D,), jnp.float32)),
        }

    return {
        "sa_in_w": w(ks[0], D, (D, 3 * D)),  "sa_in_b": b(ks[1], (3 * D,)),
        "sa_out_w": w(ks[2], D, (D, D)),     "sa_out_b": b(ks[3], (D,)),
        "ca_q_w": w(ks[4], D, (D, D)),       "ca_q_b": b(ks[5], (D,)),
        "ca_kv_w": w(ks[6], D, (D, 2 * D)),  "ca_kv_b": b(ks[7], (2 * D,)),
        "ca_out_w": w(ks[8], D, (D, D)),     "ca_out_b": b(ks[9], (D,)),
        "ff1_w": w(ks[10], D, (D, dff)),     "ff1_b": b(ks[11], (dff,)),
        "ff2_w": w(ks[12], dff, (dff, D)),   "ff2_b": b(ks[13], (D,)),
        "ada1": ada(ks[14], ks[15]),
        "ada2": ada(ks[16], ks[17]),
        "ada3": ada(ks[18], ks[19]),
    }


if __name__ == "__main__":
    # d_model=32, nhead=4, style_dim=16, dim_feedforward=64, tgt seq 8, memory seq 16
    B, T, S, D, H, STYLE, FF = 2, 8, 16, 32, 4, 16, 64
    key = jax.random.PRNGKey(0)
    k_tgt, k_mem, k_sty, k_par = jax.random.split(key, 4)
    tgt = jax.random.normal(k_tgt, (B, T, D), jnp.float32)
    memory = jax.random.normal(k_mem, (B, S, D), jnp.float32)
    style = jax.random.normal(k_sty, (B, STYLE), jnp.float32)
    params = init_params(k_par, D, STYLE, FF)

    fwd = jax.jit(partial(decoder_layer_forward, nhead=H))
    out = jax.block_until_ready(fwd(tgt, memory, style, params))
    ref = jax.block_until_ready(reference_forward(tgt, memory, style, params, nhead=H))

    assert out.shape == (B, T, D)
    err = float(jnp.max(jnp.abs(out - ref)))
    assert err < 2e-4, f"mismatch vs pure-JAX reference: max abs err = {err}"
    print("KERNEL_OK")
</pallas_src>

<mosaic_0001>
module attributes {stable_mosaic.version = 11 : i64} {
  func.func @_decoder_layer_kernel(%arg0: i32, %arg1: memref<1x8x32xf32, #tpu.memory_space<vmem>>, %arg2: memref<1x16x32xf32, #tpu.memory_space<vmem>>, %arg3: memref<1x1x16xf32, #tpu.memory_space<vmem>>, %arg4: memref<16x192xf32, #tpu.memory_space<vmem>>, %arg5: memref<1x192xf32, #tpu.memory_space<vmem>>, %arg6: memref<32x96xf32, #tpu.memory_space<vmem>>, %arg7: memref<1x96xf32, #tpu.memory_space<vmem>>, %arg8: memref<32x32xf32, #tpu.memory_space<vmem>>, %arg9: memref<1x32xf32, #tpu.memory_space<vmem>>, %arg10: memref<32x32xf32, #tpu.memory_space<vmem>>, %arg11: memref<1x32xf32, #tpu.memory_space<vmem>>, %arg12: memref<32x64xf32, #tpu.memory_space<vmem>>, %arg13: memref<1x64xf32, #tpu.memory_space<vmem>>, %arg14: memref<32x32xf32, #tpu.memory_space<vmem>>, %arg15: memref<1x32xf32, #tpu.memory_space<vmem>>, %arg16: memref<32x64xf32, #tpu.memory_space<vmem>>, %arg17: memref<1x64xf32, #tpu.memory_space<vmem>>, %arg18: memref<64x32xf32, #tpu.memory_space<vmem>>, %arg19: memref<1x32xf32, #tpu.memory_space<vmem>>, %arg20: memref<1x8x32xf32, #tpu.memory_space<vmem>>) attributes {dimension_semantics = [#tpu.dimension_semantics<parallel>], iteration_bounds = array<i64: 2>, scalar_prefetch = 0 : i64, scratch_operands = 0 : i64, tpu.core_type = #tpu.core_type<tc>, window_params = [{transform_indices = @transform_0, window_bounds = array<i64: 1, 8, 32>}, {transform_indices = @transform_1, window_bounds = array<i64: 1, 16, 32>}, {transform_indices = @transform_2, window_bounds = array<i64: 1, 1, 16>}, {pipeline_mode = #tpu.pipeline_mode<synchronous>, transform_indices = @transform_3, window_bounds = array<i64: 16, 192>}, {pipeline_mode = #tpu.pipeline_mode<synchronous>, transform_indices = @transform_4, window_bounds = array<i64: 1, 192>}, {pipeline_mode = #tpu.pipeline_mode<synchronous>, transform_indices = @transform_5, window_bounds = array<i64: 32, 96>}, {pipeline_mode = #tpu.pipeline_mode<synchronous>, transform_indices = @transform_6, window_bounds = array<i64: 1, 96>}, {pipeline_mode = #tpu.pipeline_mode<synchronous>, transform_indices = @transform_7, window_bounds = array<i64: 32, 32>}, {pipeline_mode = #tpu.pipeline_mode<synchronous>, transform_indices = @transform_8, window_bounds = array<i64: 1, 32>}, {pipeline_mode = #tpu.pipeline_mode<synchronous>, transform_indices = @transform_9, window_bounds = array<i64: 32, 32>}, {pipeline_mode = #tpu.pipeline_mode<synchronous>, transform_indices = @transform_10, window_bounds = array<i64: 1, 32>}, {pipeline_mode = #tpu.pipeline_mode<synchronous>, transform_indices = @transform_11, window_bounds = array<i64: 32, 64>}, {pipeline_mode = #tpu.pipeline_mode<synchronous>, transform_indices = @transform_12, window_bounds = array<i64: 1, 64>}, {pipeline_mode = #tpu.pipeline_mode<synchronous>, transform_indices = @transform_13, window_bounds = array<i64: 32, 32>}, {pipeline_mode = #tpu.pipeline_mode<synchronous>, transform_indices = @transform_14, window_bounds = array<i64: 1, 32>}, {pipeline_mode = #tpu.pipeline_mode<synchronous>, transform_indices = @transform_15, window_bounds = array<i64: 32, 64>}, {pipeline_mode = #tpu.pipeline_mode<synchronous>, transform_indices = @transform_16, window_bounds = array<i64: 1, 64>}, {pipeline_mode = #tpu.pipeline_mode<synchronous>, transform_indices = @transform_17, window_bounds = array<i64: 64, 32>}, {pipeline_mode = #tpu.pipeline_mode<synchronous>, transform_indices = @transform_18, window_bounds = array<i64: 1, 32>}, {transform_indices = @transform_19, window_bounds = array<i64: 1, 8, 32>}]} {
    %c0 = arith.constant 0 : index
    %c0_0 = arith.constant 0 : index
    %c0_1 = arith.constant 0 : index
    %0 = vector.load %arg1[%c0, %c0_0, %c0_1] : memref<1x8x32xf32, #tpu.memory_space<vmem>>, vector<1x8x32xf32>
    %1 = vector.shape_cast %0 : vector<1x8x32xf32> to vector<8x32xf32>
    %c0_2 = arith.constant 0 : index
    %c0_3 = arith.constant 0 : index
    %c0_4 = arith.constant 0 : index
    %2 = vector.load %arg2[%c0_2, %c0_3, %c0_4] : memref<1x16x32xf32, #tpu.memory_space<vmem>>, vector<1x16x32xf32>
    %3 = vector.shape_cast %2 : vector<1x16x32xf32> to vector<16x32xf32>
    %c0_5 = arith.constant 0 : index
    %c0_6 = arith.constant 0 : index
    %c0_7 = arith.constant 0 : index
    %4 = vector.load %arg3[%c0_5, %c0_6, %c0_7] : memref<1x1x16xf32, #tpu.memory_space<vmem>>, vector<1x1x16xf32>
    %5 = vector.shape_cast %4 : vector<1x1x16xf32> to vector<1x16xf32>
    %c0_8 = arith.constant 0 : index
    %c0_9 = arith.constant 0 : index
    %6 = vector.load %arg4[%c0_8, %c0_9] : memref<16x192xf32, #tpu.memory_space<vmem>>, vector<16x192xf32>
    %cst = arith.constant dense<0.000000e+00> : vector<1x192xf32>
    %7 = tpu.matmul %5, %6, %cst {dimension_numbers = #tpu.dot_dimension_numbers<[1], [0], [0], [1], [0, 0, 1, 1], [], []>} : vector<1x16xf32>, vector<16x192xf32>, vector<1x192xf32> -> vector<1x192xf32>
    %c0_10 = arith.constant 0 : index
    %c0_11 = arith.constant 0 : index
    %8 = vector.load %arg5[%c0_10, %c0_11] : memref<1x192xf32, #tpu.memory_space<vmem>>, vector<1x192xf32>
    %9 = arith.addf %7, %8 : vector<1x192xf32>
    %c0_12 = arith.constant 0 : index
    %c0_13 = arith.constant 0 : index
    %10 = vector.load %arg6[%c0_12, %c0_13] : memref<32x96xf32, #tpu.memory_space<vmem>>, vector<32x96xf32>
    %cst_14 = arith.constant dense<0.000000e+00> : vector<8x96xf32>
    %11 = tpu.matmul %1, %10, %cst_14 {dimension_numbers = #tpu.dot_dimension_numbers<[1], [0], [0], [1], [0, 0, 1, 1], [], []>} : vector<8x32xf32>, vector<32x96xf32>, vector<8x96xf32> -> vector<8x96xf32>
    %c0_15 = arith.constant 0 : index
    %c0_16 = arith.constant 0 : index
    %12 = vector.load %arg7[%c0_15, %c0_16] : memref<1x96xf32, #tpu.memory_space<vmem>>, vector<1x96xf32>
    %13 = vector.broadcast %12 : vector<1x96xf32> to vector<8x96xf32>
    %14 = arith.addf %11, %13 : vector<8x96xf32>
    %15 = vector.extract_strided_slice %14 {offsets = [0, 0], sizes = [8, 32], strides = [1, 1]} : vector<8x96xf32> to vector<8x32xf32>
    %16 = vector.extract_strided_slice %14 {offsets = [0, 32], sizes = [8, 32], strides = [1, 1]} : vector<8x96xf32> to vector<8x32xf32>
    %17 = vector.extract_strided_slice %14 {offsets = [0, 64], sizes = [8, 32], strides = [1, 1]} : vector<8x96xf32> to vector<8x32xf32>
    %18 = vector.extract_strided_slice %15 {offsets = [0, 0], sizes = [8, 8], strides = [1, 1]} : vector<8x32xf32> to vector<8x8xf32>
    %19 = vector.extract_strided_slice %16 {offsets = [0, 0], sizes = [8, 8], strides = [1, 1]} : vector<8x32xf32> to vector<8x8xf32>
    %20 = vector.extract_strided_slice %17 {offsets = [0, 0], sizes = [8, 8], strides = [1, 1]} : vector<8x32xf32> to vector<8x8xf32>
    %cst_17 = arith.constant dense<0.000000e+00> : vector<8x8xf32>
    %21 = tpu.matmul %18, %19, %cst_17 {dimension_numbers = #tpu.dot_dimension_numbers<[1], [1], [0], [0], [0, 0, 1, 0], [], []>} : vector<8x8xf32>, vector<8x8xf32>, vector<8x8xf32> -> vector<8x8xf32>
    %cst_18 = arith.constant 0.353553385 : f32
    %22 = vector.broadcast %cst_18 : f32 to vector<8x8xf32>
    %23 = arith.mulf %21, %22 : vector<8x8xf32>
    %cst_19 = arith.constant dense<0xFF800000> : vector<8xf32>
    %24 = vector.multi_reduction <maximumf>, %23, %cst_19 [1] : vector<8x8xf32> to vector<8xf32>
    %25 = vector.shape_cast %24 : vector<8xf32> to vector<8x1xf32>
    %26 = vector.broadcast %25 : vector<8x1xf32> to vector<8x8xf32>
    %27 = arith.subf %23, %26 : vector<8x8xf32>
    %28 = math.exp %27 : vector<8x8xf32>
    %cst_20 = arith.constant dense<0.000000e+00> : vector<8xf32>
    %29 = vector.multi_reduction <add>, %28, %cst_20 [1] : vector<8x8xf32> to vector<8xf32>
    %30 = vector.shape_cast %29 : vector<8xf32> to vector<8x1xf32>
    %cst_21 = arith.constant dense<0.000000e+00> : vector<8x8xf32>
    %31 = tpu.matmul %28, %20, %cst_21 {dimension_numbers = #tpu.dot_dimension_numbers<[1], [0], [0], [1], [0, 0, 1, 1], [], []>} : vector<8x8xf32>, vector<8x8xf32>, vector<8x8xf32> -> vector<8x8xf32>
    %32 = tpu.reciprocal %30 : vector<8x1xf32> -> vector<8x1xf32>
    %33 = vector.broadcast %32 : vector<8x1xf32> to vector<8x8xf32>
    %34 = arith.mulf %31, %33 : vector<8x8xf32>
    %35 = vector.extract_strided_slice %15 {offsets = [0, 8], sizes = [8, 8], strides = [1, 1]} : vector<8x32xf32> to vector<8x8xf32>
    %36 = vector.extract_strided_slice %16 {offsets = [0, 8], sizes = [8, 8], strides = [1, 1]} : vector<8x32xf32> to vector<8x8xf32>
    %37 = vector.extract_strided_slice %17 {offsets = [0, 8], sizes = [8, 8], strides = [1, 1]} : vector<8x32xf32> to vector<8x8xf32>
    %cst_22 = arith.constant dense<0.000000e+00> : vector<8x8xf32>
    %38 = tpu.matmul %35, %36, %cst_22 {dimension_numbers = #tpu.dot_dimension_numbers<[1], [1], [0], [0], [0, 0, 1, 0], [], []>} : vector<8x8xf32>, vector<8x8xf32>, vector<8x8xf32> -> vector<8x8xf32>
    %cst_23 = arith.constant 0.353553385 : f32
    %39 = vector.broadcast %cst_23 : f32 to vector<8x8xf32>
    %40 = arith.mulf %38, %39 : vector<8x8xf32>
    %cst_24 = arith.constant dense<0xFF800000> : vector<8xf32>
    %41 = vector.multi_reduction <maximumf>, %40, %cst_24 [1] : vector<8x8xf32> to vector<8xf32>
    %42 = vector.shape_cast %41 : vector<8xf32> to vector<8x1xf32>
    %43 = vector.broadcast %42 : vector<8x1xf32> to vector<8x8xf32>
    %44 = arith.subf %40, %43 : vector<8x8xf32>
    %45 = math.exp %44 : vector<8x8xf32>
    %cst_25 = arith.constant dense<0.000000e+00> : vector<8xf32>
    %46 = vector.multi_reduction <add>, %45, %cst_25 [1] : vector<8x8xf32> to vector<8xf32>
    %47 = vector.shape_cast %46 : vector<8xf32> to vector<8x1xf32>
    %cst_26 = arith.constant dense<0.000000e+00> : vector<8x8xf32>
    %48 = tpu.matmul %45, %37, %cst_26 {dimension_numbers = #tpu.dot_dimension_numbers<[1], [0], [0], [1], [0, 0, 1, 1], [], []>} : vector<8x8xf32>, vector<8x8xf32>, vector<8x8xf32> -> vector<8x8xf32>
    %49 = tpu.reciprocal %47 : vector<8x1xf32> -> vector<8x1xf32>
    %50 = vector.broadcast %49 : vector<8x1xf32> to vector<8x8xf32>
    %51 = arith.mulf %48, %50 : vector<8x8xf32>
    %52 = vector.extract_strided_slice %15 {offsets = [0, 16], sizes = [8, 8], strides = [1, 1]} : vector<8x32xf32> to vector<8x8xf32>
    %53 = vector.extract_strided_slice %16 {offsets = [0, 16], sizes = [8, 8], strides = [1, 1]} : vector<8x32xf32> to vector<8x8xf32>
    %54 = vector.extract_strided_slice %17 {offsets = [0, 16], sizes = [8, 8], strides = [1, 1]} : vector<8x32xf32> to vector<8x8xf32>
    %cst_27 = arith.constant dense<0.000000e+00> : vector<8x8xf32>
    %55 = tpu.matmul %52, %53, %cst_27 {dimension_numbers = #tpu.dot_dimension_numbers<[1], [1], [0], [0], [0, 0, 1, 0], [], []>} : vector<8x8xf32>, vector<8x8xf32>, vector<8x8xf32> -> vector<8x8xf32>
    %cst_28 = arith.constant 0.353553385 : f32
    %56 = vector.broadcast %cst_28 : f32 to vector<8x8xf32>
    %57 = arith.mulf %55, %56 : vector<8x8xf32>
    %cst_29 = arith.constant dense<0xFF800000> : vector<8xf32>
    %58 = vector.multi_reduction <maximumf>, %57, %cst_29 [1] : vector<8x8xf32> to vector<8xf32>
    %59 = vector.shape_cast %58 : vector<8xf32> to vector<8x1xf32>
    %60 = vector.broadcast %59 : vector<8x1xf32> to vector<8x8xf32>
    %61 = arith.subf %57, %60 : vector<8x8xf32>
    %62 = math.exp %61 : vector<8x8xf32>
    %cst_30 = arith.constant dense<0.000000e+00> : vector<8xf32>
    %63 = vector.multi_reduction <add>, %62, %cst_30 [1] : vector<8x8xf32> to vector<8xf32>
    %64 = vector.shape_cast %63 : vector<8xf32> to vector<8x1xf32>
    %cst_31 = arith.constant dense<0.000000e+00> : vector<8x8xf32>
    %65 = tpu.matmul %62, %54, %cst_31 {dimension_numbers = #tpu.dot_dimension_numbers<[1], [0], [0], [1], [0, 0, 1, 1], [], []>} : vector<8x8xf32>, vector<8x8xf32>, vector<8x8xf32> -> vector<8x8xf32>
    %66 = tpu.reciprocal %64 : vector<8x1xf32> -> vector<8x1xf32>
    %67 = vector.broadcast %66 : vector<8x1xf32> to vector<8x8xf32>
    %68 = arith.mulf %65, %67 : vector<8x8xf32>
    %69 = vector.extract_strided_slice %15 {offsets = [0, 24], sizes = [8, 8], strides = [1, 1]} : vector<8x32xf32> to vector<8x8xf32>
    %70 = vector.extract_strided_slice %16 {offsets = [0, 24], sizes = [8, 8], strides = [1, 1]} : vector<8x32xf32> to vector<8x8xf32>
    %71 = vector.extract_strided_slice %17 {offsets = [0, 24], sizes = [8, 8], strides = [1, 1]} : vector<8x32xf32> to vector<8x8xf32>
    %cst_32 = arith.constant dense<0.000000e+00> : vector<8x8xf32>
    %72 = tpu.matmul %69, %70, %cst_32 {dimension_numbers = #tpu.dot_dimension_numbers<[1], [1], [0], [0], [0, 0, 1, 0], [], []>} : vector<8x8xf32>, vector<8x8xf32>, vector<8x8xf32> -> vector<8x8xf32>
    %cst_33 = arith.constant 0.353553385 : f32
    %73 = vector.broadcast %cst_33 : f32 to vector<8x8xf32>
    %74 = arith.mulf %72, %73 : vector<8x8xf32>
    %cst_34 = arith.constant dense<0xFF800000> : vector<8xf32>
    %75 = vector.multi_reduction <maximumf>, %74, %cst_34 [1] : vector<8x8xf32> to vector<8xf32>
    %76 = vector.shape_cast %75 : vector<8xf32> to vector<8x1xf32>
    %77 = vector.broadcast %76 : vector<8x1xf32> to vector<8x8xf32>
    %78 = arith.subf %74, %77 : vector<8x8xf32>
    %79 = math.exp %78 : vector<8x8xf32>
    %cst_35 = arith.constant dense<0.000000e+00> : vector<8xf32>
    %80 = vector.multi_reduction <add>, %79, %cst_35 [1] : vector<8x8xf32> to vector<8xf32>
    %81 = vector.shape_cast %80 : vector<8xf32> to vector<8x1xf32>
    %cst_36 = arith.constant dense<0.000000e+00> : vector<8x8xf32>
    %82 = tpu.matmul %79, %71, %cst_36 {dimension_numbers = #tpu.dot_dimension_numbers<[1], [0], [0], [1], [0, 0, 1, 1], [], []>} : vector<8x8xf32>, vector<8x8xf32>, vector<8x8xf32> -> vector<8x8xf32>
    %83 = tpu.reciprocal %81 : vector<8x1xf32> -> vector<8x1xf32>
    %84 = vector.broadcast %83 : vector<8x1xf32> to vector<8x8xf32>
    %85 = arith.mulf %82, %84 : vector<8x8xf32>
    %86 = tpu.concatenate %34, %51, %68, %85 in 1 : vector<8x8xf32>, vector<8x8xf32>, vector<8x8xf32>, vector<8x8xf32> -> vector<8x32xf32>
    %c0_37 = arith.constant 0 : index
    %c0_38 = arith.constant 0 : index
    %87 = vector.load %arg8[%c0_37, %c0_38] : memref<32x32xf32, #tpu.memory_space<vmem>>, vector<32x32xf32>
    %cst_39 = arith.constant dense<0.000000e+00> : vector<8x32xf32>
    %88 = tpu.matmul %86, %87, %cst_39 {dimension_numbers = #tpu.dot_dimension_numbers<[1], [0], [0], [1], [0, 0, 1, 1], [], []>} : vector<8x32xf32>, vector<32x32xf32>, vector<8x32xf32> -> vector<8x32xf32>
    %c0_40 = arith.constant 0 : index
    %c0_41 = arith.constant 0 : index
    %89 = vector.load %arg9[%c0_40, %c0_41] : memref<1x32xf32, #tpu.memory_space<vmem>>, vector<1x32xf32>
    %90 = vector.broadcast %89 : vector<1x32xf32> to vector<8x32xf32>
    %91 = arith.addf %88, %90 : vector<8x32xf32>
    %92 = arith.addf %1, %91 : vector<8x32xf32>
    %93 = vector.extract_strided_slice %9 {offsets = [0, 0], sizes = [1, 32], strides = [1, 1]} : vector<1x192xf32> to vector<1x32xf32>
    %94 = vector.extract_strided_slice %9 {offsets = [0, 32], sizes = [1, 32], strides = [1, 1]} : vector<1x192xf32> to vector<1x32xf32>
    %cst_42 = arith.constant dense<0.000000e+00> : vector<8xf32>
    %95 = vector.multi_reduction <add>, %92, %cst_42 [1] : vector<8x32xf32> to vector<8xf32>
    %96 = vector.shape_cast %95 : vector<8xf32> to vector<8x1xf32>
    %cst_43 = arith.constant 3.200000e+01 : f32
    %97 = vector.broadcast %cst_43 : f32 to vector<8x1xf32>
    %98 = arith.divf %96, %97 : vector<8x1xf32>
    %99 = vector.broadcast %98 : vector<8x1xf32> to vector<8x32xf32>
    %100 = arith.subf %92, %99 : vector<8x32xf32>
    %101 = arith.mulf %100, %100 : vector<8x32xf32>
    %cst_44 = arith.constant dense<0.000000e+00> : vector<8xf32>
    %102 = vector.multi_reduction <add>, %101, %cst_44 [1] : vector<8x32xf32> to vector<8xf32>
    %103 = vector.shape_cast %102 : vector<8xf32> to vector<8x1xf32>
    %cst_45 = arith.constant 3.200000e+01 : f32
    %104 = vector.broadcast %cst_45 : f32 to vector<8x1xf32>
    %105 = arith.divf %103, %104 : vector<8x1xf32>
    %cst_46 = arith.constant 9.99999974E-6 : f32
    %106 = vector.broadcast %cst_46 : f32 to vector<8x1xf32>
    %107 = arith.addf %105, %106 : vector<8x1xf32>
    %108 = math.rsqrt %107 : vector<8x1xf32>
    %109 = vector.broadcast %108 : vector<8x1xf32> to vector<8x32xf32>
    %110 = arith.mulf %100, %109 : vector<8x32xf32>
    %111 = vector.broadcast %93 : vector<1x32xf32> to vector<8x32xf32>
    %112 = arith.mulf %111, %110 : vector<8x32xf32>
    %113 = vector.broadcast %94 : vector<1x32xf32> to vector<8x32xf32>
    %114 = arith.addf %112, %113 : vector<8x32xf32>
    %c0_47 = arith.constant 0 : index
    %c0_48 = arith.constant 0 : index
    %115 = vector.load %arg10[%c0_47, %c0_48] : memref<32x32xf32, #tpu.memory_space<vmem>>, vector<32x32xf32>
    %cst_49 = arith.constant dense<0.000000e+00> : vector<8x32xf32>
    %116 = tpu.matmul %114, %115, %cst_49 {dimension_numbers = #tpu.dot_dimension_numbers<[1], [0], [0], [1], [0, 0, 1, 1], [], []>} : vector<8x32xf32>, vector<32x32xf32>, vector<8x32xf32> -> vector<8x32xf32>
    %c0_50 = arith.constant 0 : index
    %c0_51 = arith.constant 0 : index
    %117 = vector.load %arg11[%c0_50, %c0_51] : memref<1x32xf32, #tpu.memory_space<vmem>>, vector<1x32xf32>
    %118 = vector.broadcast %117 : vector<1x32xf32> to vector<8x32xf32>
    %119 = arith.addf %116, %118 : vector<8x32xf32>
    %c0_52 = arith.constant 0 : index
    %c0_53 = arith.constant 0 : index
    %120 = vector.load %arg12[%c0_52, %c0_53] : memref<32x64xf32, #tpu.memory_space<vmem>>, vector<32x64xf32>
    %cst_54 = arith.constant dense<0.000000e+00> : vector<16x64xf32>
    %121 = tpu.matmul %3, %120, %cst_54 {dimension_numbers = #tpu.dot_dimension_numbers<[1], [0], [0], [1], [0, 0, 1, 1], [], []>} : vector<16x32xf32>, vector<32x64xf32>, vector<16x64xf32> -> vector<16x64xf32>
    %c0_55 = arith.constant 0 : index
    %c0_56 = arith.constant 0 : index
    %122 = vector.load %arg13[%c0_55, %c0_56] : memref<1x64xf32, #tpu.memory_space<vmem>>, vector<1x64xf32>
    %123 = vector.broadcast %122 : vector<1x64xf32> to vector<16x64xf32>
    %124 = arith.addf %121, %123 : vector<16x64xf32>
    %125 = vector.extract_strided_slice %124 {offsets = [0, 0], sizes = [16, 32], strides = [1, 1]} : vector<16x64xf32> to vector<16x32xf32>
    %126 = vector.extract_strided_slice %124 {offsets = [0, 32], sizes = [16, 32], strides = [1, 1]} : vector<16x64xf32> to vector<16x32xf32>
    %127 = vector.extract_strided_slice %119 {offsets = [0, 0], sizes = [8, 8], strides = [1, 1]} : vector<8x32xf32> to vector<8x8xf32>
    %128 = vector.extract_strided_slice %125 {offsets = [0, 0], sizes = [16, 8], strides = [1, 1]} : vector<16x32xf32> to vector<16x8xf32>
    %129 = vector.extract_strided_slice %126 {offsets = [0, 0], sizes = [16, 8], strides = [1, 1]} : vector<16x32xf32> to vector<16x8xf32>
    %cst_57 = arith.constant dense<0.000000e+00> : vector<8x16xf32>
    %130 = tpu.matmul %127, %128, %cst_57 {dimension_numbers = #tpu.dot_dimension_numbers<[1], [1], [0], [0], [0, 0, 1, 0], [], []>} : vector<8x8xf32>, vector<16x8xf32>, vector<8x16xf32> -> vector<8x16xf32>
    %cst_58 = arith.constant 0.353553385 : f32
    %131 = vector.broadcast %cst_58 : f32 to vector<8x16xf32>
    %132 = arith.mulf %130, %131 : vector<8x16xf32>
    %cst_59 = arith.constant dense<0xFF800000> : vector<8xf32>
    %133 = vector.multi_reduction <maximumf>, %132, %cst_59 [1] : vector<8x16xf32> to vector<8xf32>
    %134 = vector.shape_cast %133 : vector<8xf32> to vector<8x1xf32>
    %135 = vector.broadcast %134 : vector<8x1xf32> to vector<8x16xf32>
    %136 = arith.subf %132, %135 : vector<8x16xf32>
    %137 = math.exp %136 : vector<8x16xf32>
    %cst_60 = arith.constant dense<0.000000e+00> : vector<8xf32>
    %138 = vector.multi_reduction <add>, %137, %cst_60 [1] : vector<8x16xf32> to vector<8xf32>
    %139 = vector.shape_cast %138 : vector<8xf32> to vector<8x1xf32>
    %cst_61 = arith.constant dense<0.000000e+00> : vector<8x8xf32>
    %140 = tpu.matmul %137, %129, %cst_61 {dimension_numbers = #tpu.dot_dimension_numbers<[1], [0], [0], [1], [0, 0, 1, 1], [], []>} : vector<8x16xf32>, vector<16x8xf32>, vector<8x8xf32> -> vector<8x8xf32>
    %141 = tpu.reciprocal %139 : vector<8x1xf32> -> vector<8x1xf32>
    %142 = vector.broadcast %141 : vector<8x1xf32> to vector<8x8xf32>
    %143 = arith.mulf %140, %142 : vector<8x8xf32>
    %144 = vector.extract_strided_slice %119 {offsets = [0, 8], sizes = [8, 8], strides = [1, 1]} : vector<8x32xf32> to vector<8x8xf32>
    %145 = vector.extract_strided_slice %125 {offsets = [0, 8], sizes = [16, 8], strides = [1, 1]} : vector<16x32xf32> to vector<16x8xf32>
    %146 = vector.extract_strided_slice %126 {offsets = [0, 8], sizes = [16, 8], strides = [1, 1]} : vector<16x32xf32> to vector<16x8xf32>
    %cst_62 = arith.constant dense<0.000000e+00> : vector<8x16xf32>
    %147 = tpu.matmul %144, %145, %cst_62 {dimension_numbers = #tpu.dot_dimension_numbers<[1], [1], [0], [0], [0, 0, 1, 0], [], []>} : vector<8x8xf32>, vector<16x8xf32>, vector<8x16xf32> -> vector<8x16xf32>
    %cst_63 = arith.constant 0.353553385 : f32
    %148 = vector.broadcast %cst_63 : f32 to vector<8x16xf32>
    %149 = arith.mulf %147, %148 : vector<8x16xf32>
    %cst_64 = arith.constant dense<0xFF800000> : vector<8xf32>
    %150 = vector.multi_reduction <maximumf>, %149, %cst_64 [1] : vector<8x16xf32> to vector<8xf32>
    %151 = vector.shape_cast %150 : vector<8xf32> to vector<8x1xf32>
    %152 = vector.broadcast %151 : vector<8x1xf32> to vector<8x16xf32>
    %153 = arith.subf %149, %152 : vector<8x16xf32>
    %154 = math.exp %153 : vector<8x16xf32>
    %cst_65 = arith.constant dense<0.000000e+00> : vector<8xf32>
    %155 = vector.multi_reduction <add>, %154, %cst_65 [1] : vector<8x16xf32> to vector<8xf32>
    %156 = vector.shape_cast %155 : vector<8xf32> to vector<8x1xf32>
    %cst_66 = arith.constant dense<0.000000e+00> : vector<8x8xf32>
    %157 = tpu.matmul %154, %146, %cst_66 {dimension_numbers = #tpu.dot_dimension_numbers<[1], [0], [0], [1], [0, 0, 1, 1], [], []>} : vector<8x16xf32>, vector<16x8xf32>, vector<8x8xf32> -> vector<8x8xf32>
    %158 = tpu.reciprocal %156 : vector<8x1xf32> -> vector<8x1xf32>
    %159 = vector.broadcast %158 : vector<8x1xf32> to vector<8x8xf32>
    %160 = arith.mulf %157, %159 : vector<8x8xf32>
    %161 = vector.extract_strided_slice %119 {offsets = [0, 16], sizes = [8, 8], strides = [1, 1]} : vector<8x32xf32> to vector<8x8xf32>
    %162 = vector.extract_strided_slice %125 {offsets = [0, 16], sizes = [16, 8], strides = [1, 1]} : vector<16x32xf32> to vector<16x8xf32>
    %163 = vector.extract_strided_slice %126 {offsets = [0, 16], sizes = [16, 8], strides = [1, 1]} : vector<16x32xf32> to vector<16x8xf32>
    %cst_67 = arith.constant dense<0.000000e+00> : vector<8x16xf32>
    %164 = tpu.matmul %161, %162, %cst_67 {dimension_numbers = #tpu.dot_dimension_numbers<[1], [1], [0], [0], [0, 0, 1, 0], [], []>} : vector<8x8xf32>, vector<16x8xf32>, vector<8x16xf32> -> vector<8x16xf32>
    %cst_68 = arith.constant 0.353553385 : f32
    %165 = vector.broadcast %cst_68 : f32 to vector<8x16xf32>
    %166 = arith.mulf %164, %165 : vector<8x16xf32>
    %cst_69 = arith.constant dense<0xFF800000> : vector<8xf32>
    %167 = vector.multi_reduction <maximumf>, %166, %cst_69 [1] : vector<8x16xf32> to vector<8xf32>
    %168 = vector.shape_cast %167 : vector<8xf32> to vector<8x1xf32>
    %169 = vector.broadcast %168 : vector<8x1xf32> to vector<8x16xf32>
    %170 = arith.subf %166, %169 : vector<8x16xf32>
    %171 = math.exp %170 : vector<8x16xf32>
    %cst_70 = arith.constant dense<0.000000e+00> : vector<8xf32>
    %172 = vector.multi_reduction <add>, %171, %cst_70 [1] : vector<8x16xf32> to vector<8xf32>
    %173 = vector.shape_cast %172 : vector<8xf32> to vector<8x1xf32>
    %cst_71 = arith.constant dense<0.000000e+00> : vector<8x8xf32>
    %174 = tpu.matmul %171, %163, %cst_71 {dimension_numbers = #tpu.dot_dimension_numbers<[1], [0], [0], [1], [0, 0, 1, 1], [], []>} : vector<8x16xf32>, vector<16x8xf32>, vector<8x8xf32> -> vector<8x8xf32>
    %175 = tpu.reciprocal %173 : vector<8x1xf32> -> vector<8x1xf32>
    %176 = vector.broadcast %175 : vector<8x1xf32> to vector<8x8xf32>
    %177 = arith.mulf %174, %176 : vector<8x8xf32>
    %178 = vector.extract_strided_slice %119 {offsets = [0, 24], sizes = [8, 8], strides = [1, 1]} : vector<8x32xf32> to vector<8x8xf32>
    %179 = vector.extract_strided_slice %125 {offsets = [0, 24], sizes = [16, 8], strides = [1, 1]} : vector<16x32xf32> to vector<16x8xf32>
    %180 = vector.extract_strided_slice %126 {offsets = [0, 24], sizes = [16, 8], strides = [1, 1]} : vector<16x32xf32> to vector<16x8xf32>
    %cst_72 = arith.constant dense<0.000000e+00> : vector<8x16xf32>
    %181 = tpu.matmul %178, %179, %cst_72 {dimension_numbers = #tpu.dot_dimension_numbers<[1], [1], [0], [0], [0, 0, 1, 0], [], []>} : vector<8x8xf32>, vector<16x8xf32>, vector<8x16xf32> -> vector<8x16xf32>
    %cst_73 = arith.constant 0.353553385 : f32
    %182 = vector.broadcast %cst_73 : f32 to vector<8x16xf32>
    %183 = arith.mulf %181, %182 : vector<8x16xf32>
    %cst_74 = arith.constant dense<0xFF800000> : vector<8xf32>
    %184 = vector.multi_reduction <maximumf>, %183, %cst_74 [1] : vector<8x16xf32> to vector<8xf32>
    %185 = vector.shape_cast %184 : vector<8xf32> to vector<8x1xf32>
    %186 = vector.broadcast %185 : vector<8x1xf32> to vector<8x16xf32>
    %187 = arith.subf %183, %186 : vector<8x16xf32>
    %188 = math.exp %187 : vector<8x16xf32>
    %cst_75 = arith.constant dense<0.000000e+00> : vector<8xf32>
    %189 = vector.multi_reduction <add>, %188, %cst_75 [1] : vector<8x16xf32> to vector<8xf32>
    %190 = vector.shape_cast %189 : vector<8xf32> to vector<8x1xf32>
    %cst_76 = arith.constant dense<0.000000e+00> : vector<8x8xf32>
    %191 = tpu.matmul %188, %180, %cst_76 {dimension_numbers = #tpu.dot_dimension_numbers<[1], [0], [0], [1], [0, 0, 1, 1], [], []>} : vector<8x16xf32>, vector<16x8xf32>, vector<8x8xf32> -> vector<8x8xf32>
    %192 = tpu.reciprocal %190 : vector<8x1xf32> -> vector<8x1xf32>
    %193 = vector.broadcast %192 : vector<8x1xf32> to vector<8x8xf32>
    %194 = arith.mulf %191, %193 : vector<8x8xf32>
    %195 = tpu.concatenate %143, %160, %177, %194 in 1 : vector<8x8xf32>, vector<8x8xf32>, vector<8x8xf32>, vector<8x8xf32> -> vector<8x32xf32>
    %c0_77 = arith.constant 0 : index
    %c0_78 = arith.constant 0 : index
    %196 = vector.load %arg14[%c0_77, %c0_78] : memref<32x32xf32, #tpu.memory_space<vmem>>, vector<32x32xf32>
    %cst_79 = arith.constant dense<0.000000e+00> : vector<8x32xf32>
    %197 = tpu.matmul %195, %196, %cst_79 {dimension_numbers = #tpu.dot_dimension_numbers<[1], [0], [0], [1], [0, 0, 1, 1], [], []>} : vector<8x32xf32>, vector<32x32xf32>, vector<8x32xf32> -> vector<8x32xf32>
    %c0_80 = arith.constant 0 : index
    %c0_81 = arith.constant 0 : index
    %198 = vector.load %arg15[%c0_80, %c0_81] : memref<1x32xf32, #tpu.memory_space<vmem>>, vector<1x32xf32>
    %199 = vector.broadcast %198 : vector<1x32xf32> to vector<8x32xf32>
    %200 = arith.addf %197, %199 : vector<8x32xf32>
    %201 = arith.addf %114, %200 : vector<8x32xf32>
    %202 = vector.extract_strided_slice %9 {offsets = [0, 64], sizes = [1, 32], strides = [1, 1]} : vector<1x192xf32> to vector<1x32xf32>
    %203 = vector.extract_strided_slice %9 {offsets = [0, 96], sizes = [1, 32], strides = [1, 1]} : vector<1x192xf32> to vector<1x32xf32>
    %cst_82 = arith.constant dense<0.000000e+00> : vector<8xf32>
    %204 = vector.multi_reduction <add>, %201, %cst_82 [1] : vector<8x32xf32> to vector<8xf32>
    %205 = vector.shape_cast %204 : vector<8xf32> to vector<8x1xf32>
    %cst_83 = arith.constant 3.200000e+01 : f32
    %206 = vector.broadcast %cst_83 : f32 to vector<8x1xf32>
    %207 = arith.divf %205, %206 : vector<8x1xf32>
    %208 = vector.broadcast %207 : vector<8x1xf32> to vector<8x32xf32>
    %209 = arith.subf %201, %208 : vector<8x32xf32>
    %210 = arith.mulf %209, %209 : vector<8x32xf32>
    %cst_84 = arith.constant dense<0.000000e+00> : vector<8xf32>
    %211 = vector.multi_reduction <add>, %210, %cst_84 [1] : vector<8x32xf32> to vector<8xf32>
    %212 = vector.shape_cast %211 : vector<8xf32> to vector<8x1xf32>
    %cst_85 = arith.constant 3.200000e+01 : f32
    %213 = vector.broadcast %cst_85 : f32 to vector<8x1xf32>
    %214 = arith.divf %212, %213 : vector<8x1xf32>
    %cst_86 = arith.constant 9.99999974E-6 : f32
    %215 = vector.broadcast %cst_86 : f32 to vector<8x1xf32>
    %216 = arith.addf %214, %215 : vector<8x1xf32>
    %217 = math.rsqrt %216 : vector<8x1xf32>
    %218 = vector.broadcast %217 : vector<8x1xf32> to vector<8x32xf32>
    %219 = arith.mulf %209, %218 : vector<8x32xf32>
    %220 = vector.broadcast %202 : vector<1x32xf32> to vector<8x32xf32>
    %221 = arith.mulf %220, %219 : vector<8x32xf32>
    %222 = vector.broadcast %203 : vector<1x32xf32> to vector<8x32xf32>
    %223 = arith.addf %221, %222 : vector<8x32xf32>
    %c0_87 = arith.constant 0 : index
    %c0_88 = arith.constant 0 : index
    %224 = vector.load %arg16[%c0_87, %c0_88] : memref<32x64xf32, #tpu.memory_space<vmem>>, vector<32x64xf32>
    %cst_89 = arith.constant dense<0.000000e+00> : vector<8x64xf32>
    %225 = tpu.matmul %223, %224, %cst_89 {dimension_numbers = #tpu.dot_dimension_numbers<[1], [0], [0], [1], [0, 0, 1, 1], [], []>} : vector<8x32xf32>, vector<32x64xf32>, vector<8x64xf32> -> vector<8x64xf32>
    %c0_90 = arith.constant 0 : index
    %c0_91 = arith.constant 0 : index
    %226 = vector.load %arg17[%c0_90, %c0_91] : memref<1x64xf32, #tpu.memory_space<vmem>>, vector<1x64xf32>
    %227 = vector.broadcast %226 : vector<1x64xf32> to vector<8x64xf32>
    %228 = arith.addf %225, %227 : vector<8x64xf32>
    %229 = arith.mulf %228, %228 : vector<8x64xf32>
    %230 = arith.mulf %228, %229 : vector<8x64xf32>
    %cst_92 = arith.constant 4.471500e-02 : f32
    %231 = vector.broadcast %cst_92 : f32 to vector<8x64xf32>
    %232 = arith.mulf %231, %230 : vector<8x64xf32>
    %233 = arith.addf %228, %232 : vector<8x64xf32>
    %cst_93 = arith.constant 0.797884583 : f32
    %234 = vector.broadcast %cst_93 : f32 to vector<8x64xf32>
    %235 = arith.mulf %234, %233 : vector<8x64xf32>
    %236 = math.tanh %235 : vector<8x64xf32>
    %cst_94 = arith.constant 1.000000e+00 : f32
    %237 = vector.broadcast %cst_94 : f32 to vector<8x64xf32>
    %238 = arith.addf %237, %236 : vector<8x64xf32>
    %cst_95 = arith.constant 5.000000e-01 : f32
    %239 = vector.broadcast %cst_95 : f32 to vector<8x64xf32>
    %240 = arith.mulf %239, %238 : vector<8x64xf32>
    %241 = arith.mulf %228, %240 : vector<8x64xf32>
    %c0_96 = arith.constant 0 : index
    %c0_97 = arith.constant 0 : index
    %242 = vector.load %arg18[%c0_96, %c0_97] : memref<64x32xf32, #tpu.memory_space<vmem>>, vector<64x32xf32>
    %cst_98 = arith.constant dense<0.000000e+00> : vector<8x32xf32>
    %243 = tpu.matmul %241, %242, %cst_98 {dimension_numbers = #tpu.dot_dimension_numbers<[1], [0], [0], [1], [0, 0, 1, 1], [], []>} : vector<8x64xf32>, vector<64x32xf32>, vector<8x32xf32> -> vector<8x32xf32>
    %c0_99 = arith.constant 0 : index
    %c0_100 = arith.constant 0 : index
    %244 = vector.load %arg19[%c0_99, %c0_100] : memref<1x32xf32, #tpu.memory_space<vmem>>, vector<1x32xf32>
    %245 = vector.broadcast %244 : vector<1x32xf32> to vector<8x32xf32>
    %246 = arith.addf %243, %245 : vector<8x32xf32>
    %247 = arith.addf %223, %246 : vector<8x32xf32>
    %248 = vector.extract_strided_slice %9 {offsets = [0, 128], sizes = [1, 32], strides = [1, 1]} : vector<1x192xf32> to vector<1x32xf32>
    %249 = vector.extract_strided_slice %9 {offsets = [0, 160], sizes = [1, 32], strides = [1, 1]} : vector<1x192xf32> to vector<1x32xf32>
    %cst_101 = arith.constant dense<0.000000e+00> : vector<8xf32>
    %250 = vector.multi_reduction <add>, %247, %cst_101 [1] : vector<8x32xf32> to vector<8xf32>
    %251 = vector.shape_cast %250 : vector<8xf32> to vector<8x1xf32>
    %cst_102 = arith.constant 3.200000e+01 : f32
    %252 = vector.broadcast %cst_102 : f32 to vector<8x1xf32>
    %253 = arith.divf %251, %252 : vector<8x1xf32>
    %254 = vector.broadcast %253 : vector<8x1xf32> to vector<8x32xf32>
    %255 = arith.subf %247, %254 : vector<8x32xf32>
    %256 = arith.mulf %255, %255 : vector<8x32xf32>
    %cst_103 = arith.constant dense<0.000000e+00> : vector<8xf32>
    %257 = vector.multi_reduction <add>, %256, %cst_103 [1] : vector<8x32xf32> to vector<8xf32>
    %258 = vector.shape_cast %257 : vector<8xf32> to vector<8x1xf32>
    %cst_104 = arith.constant 3.200000e+01 : f32
    %259 = vector.broadcast %cst_104 : f32 to vector<8x1xf32>
    %260 = arith.divf %258, %259 : vector<8x1xf32>
    %cst_105 = arith.constant 9.99999974E-6 : f32
    %261 = vector.broadcast %cst_105 : f32 to vector<8x1xf32>
    %262 = arith.addf %260, %261 : vector<8x1xf32>
    %263 = math.rsqrt %262 : vector<8x1xf32>
    %264 = vector.broadcast %263 : vector<8x1xf32> to vector<8x32xf32>
    %265 = arith.mulf %255, %264 : vector<8x32xf32>
    %266 = vector.broadcast %248 : vector<1x32xf32> to vector<8x32xf32>
    %267 = arith.mulf %266, %265 : vector<8x32xf32>
    %268 = vector.broadcast %249 : vector<1x32xf32> to vector<8x32xf32>
    %269 = arith.addf %267, %268 : vector<8x32xf32>
    %c0_106 = arith.constant 0 : index
    %c0_107 = arith.constant 0 : index
    %c0_108 = arith.constant 0 : index
    %270 = vector.load %arg20[%c0_106, %c0_107, %c0_108] : memref<1x8x32xf32, #tpu.memory_space<vmem>>, vector<1x8x32xf32>
    %271 = vector.shape_cast %270 : vector<1x8x32xf32> to vector<8x32xf32>
    %272 = vector.shape_cast %269 : vector<8x32xf32> to vector<1x8x32xf32>
    tpu.vector_store %arg20[%c0_106, %c0_107, %c0_108], %272 {strides = array<i32>} : memref<1x8x32xf32, #tpu.memory_space<vmem>>, vector<1x8x32xf32>,
    return
  }
  func.func @transform_0(%arg0: i32) -> (i32, i32, i32) {
    %c0_i32 = arith.constant 0 : i32
    %c0_i32_0 = arith.constant 0 : i32
    %c0_i32_1 = arith.constant 0 : i32
    return %arg0, %c0_i32, %c0_i32_0 : i32, i32, i32
  }
  func.func @transform_1(%arg0: i32) -> (i32, i32, i32) {
    %c0_i32 = arith.constant 0 : i32
    %c0_i32_0 = arith.constant 0 : i32
    %c0_i32_1 = arith.constant 0 : i32
    return %arg0, %c0_i32, %c0_i32_0 : i32, i32, i32
  }
  func.func @transform_2(%arg0: i32) -> (i32, i32, i32) {
    %c0_i32 = arith.constant 0 : i32
    %c0_i32_0 = arith.constant 0 : i32
    %c0_i32_1 = arith.constant 0 : i32
    return %arg0, %c0_i32, %c0_i32_0 : i32, i32, i32
  }
  func.func @transform_3(%arg0: i32) -> (i32, i32) {
    %c0_i32 = arith.constant 0 : i32
    %c0_i32_0 = arith.constant 0 : i32
    %c0_i32_1 = arith.constant 0 : i32
    return %c0_i32, %c0_i32_0 : i32, i32
  }
  func.func @transform_4(%arg0: i32) -> (i32, i32) {
    %c0_i32 = arith.constant 0 : i32
    %c0_i32_0 = arith.constant 0 : i32
    %c0_i32_1 = arith.constant 0 : i32
    return %c0_i32, %c0_i32_0 : i32, i32
  }
  func.func @transform_5(%arg0: i32) -> (i32, i32) {
    %c0_i32 = arith.constant 0 : i32
    %c0_i32_0 = arith.constant 0 : i32
    %c0_i32_1 = arith.constant 0 : i32
    return %c0_i32, %c0_i32_0 : i32, i32
  }
  func.func @transform_6(%arg0: i32) -> (i32, i32) {
    %c0_i32 = arith.constant 0 : i32
    %c0_i32_0 = arith.constant 0 : i32
    %c0_i32_1 = arith.constant 0 : i32
    return %c0_i32, %c0_i32_0 : i32, i32
  }
  func.func @transform_7(%arg0: i32) -> (i32, i32) {
    %c0_i32 = arith.constant 0 : i32
    %c0_i32_0 = arith.constant 0 : i32
    %c0_i32_1 = arith.constant 0 : i32
    return %c0_i32, %c0_i32_0 : i32, i32
  }
  func.func @transform_8(%arg0: i32) -> (i32, i32) {
    %c0_i32 = arith.constant 0 : i32
    %c0_i32_0 = arith.constant 0 : i32
    %c0_i32_1 = arith.constant 0 : i32
    return %c0_i32, %c0_i32_0 : i32, i32
  }
  func.func @transform_9(%arg0: i32) -> (i32, i32) {
    %c0_i32 = arith.constant 0 : i32
    %c0_i32_0 = arith.constant 0 : i32
    %c0_i32_1 = arith.constant 0 : i32
    return %c0_i32, %c0_i32_0 : i32, i32
  }
  func.func @transform_10(%arg0: i32) -> (i32, i32) {
    %c0_i32 = arith.constant 0 : i32
    %c0_i32_0 = arith.constant 0 : i32
    %c0_i32_1 = arith.constant 0 : i32
    return %c0_i32, %c0_i32_0 : i32, i32
  }
  func.func @transform_11(%arg0: i32) -> (i32, i32) {
    %c0_i32 = arith.constant 0 : i32
    %c0_i32_0 = arith.constant 0 : i32
    %c0_i32_1 = arith.constant 0 : i32
    return %c0_i32, %c0_i32_0 : i32, i32
  }
  func.func @transform_12(%arg0: i32) -> (i32, i32) {
    %c0_i32 = arith.constant 0 : i32
    %c0_i32_0 = arith.constant 0 : i32
    %c0_i32_1 = arith.constant 0 : i32
    return %c0_i32, %c0_i32_0 : i32, i32
  }
  func.func @transform_13(%arg0: i32) -> (i32, i32) {
    %c0_i32 = arith.constant 0 : i32
    %c0_i32_0 = arith.constant 0 : i32
    %c0_i32_1 = arith.constant 0 : i32
    return %c0_i32, %c0_i32_0 : i32, i32
  }
  func.func @transform_14(%arg0: i32) -> (i32, i32) {
    %c0_i32 = arith.constant 0 : i32
    %c0_i32_0 = arith.constant 0 : i32
    %c0_i32_1 = arith.constant 0 : i32
    return %c0_i32, %c0_i32_0 : i32, i32
  }
  func.func @transform_15(%arg0: i32) -> (i32, i32) {
    %c0_i32 = arith.constant 0 : i32
    %c0_i32_0 = arith.constant 0 : i32
    %c0_i32_1 = arith.constant 0 : i32
    return %c0_i32, %c0_i32_0 : i32, i32
  }
  func.func @transform_16(%arg0: i32) -> (i32, i32) {
    %c0_i32 = arith.constant 0 : i32
    %c0_i32_0 = arith.constant 0 : i32
    %c0_i32_1 = arith.constant 0 : i32
    return %c0_i32, %c0_i32_0 : i32, i32
  }
  func.func @transform_17(%arg0: i32) -> (i32, i32) {
    %c0_i32 = arith.constant 0 : i32
    %c0_i32_0 = arith.constant 0 : i32
    %c0_i32_1 = arith.constant 0 : i32
    return %c0_i32, %c0_i32_0 : i32, i32
  }
  func.func @transform_18(%arg0: i32) -> (i32, i32) {
    %c0_i32 = arith.constant 0 : i32
    %c0_i32_0 = arith.constant 0 : i32
    %c0_i32_1 = arith.constant 0 : i32
    return %c0_i32, %c0_i32_0 : i32, i32
  }
  func.func @transform_19(%arg0: i32) -> (i32, i32, i32) {
    %c0_i32 = arith.constant 0 : i32
    %c0_i32_0 = arith.constant 0 : i32
    %c0_i32_1 = arith.constant 0 : i32
    return %arg0, %c0_i32, %c0_i32_0 : i32, i32, i32
  }
}

</mosaic_0001>

<bundles_post_ra>
// kernel: decoder_layer_forward.1
= control target key start
LH: loop header
LB: loop body
LE: loop exit
PB: predicated region body
PF: predicated region fallthrough
CT: control target
= control target key end

     0   :  { %s4111_s0 = inlined_call_operand.vmem [shape: f32[2,8,32], index: 0, kind: input, shape index: {}]   ;;  %s4112_s1 = inlined_call_operand.vmem [shape: f32[2,16,32], index: 1, kind: input, shape index: {}]   ;;  %s4113_s2 = inlined_call_operand.vmem [shape: f32[2,1,16], index: 2, kind: input, shape index: {}]   ;;  %s4114_s3 = inlined_call_operand.vmem [shape: f32[16,192], index: 3, kind: input, shape index: {}]   ;;  %s4115_s4 = inlined_call_operand.vmem [shape: f32[1,192], index: 4, kind: input, shape index: {}]   ;;  %s4116_s5 = inlined_call_operand.vmem [shape: f32[32,96], index: 5, kind: input, shape index: {}]   ;;  %s4117_s6 = inlined_call_operand.vmem [shape: f32[1,96], index: 6, kind: input, shape index: {}]   ;;  %s4118_s7 = inlined_call_operand.vmem [shape: f32[32,32], index: 7, kind: input, shape index: {}]   ;;  %s4119_s8 = inlined_call_operand.vmem [shape: f32[1,32], index: 8, kind: input, shape index: {}]   ;;  %s4120_s9 = inlined_call_operand.vmem [shape: f32[32,32], index: 9, kind: input, shape index: {}]   ;;  %s4121_s10 = inlined_call_operand.vmem [shape: f32[1,32], index: 10, kind: input, shape index: {}]   ;;  %s4122_s11 = inlined_call_operand.vmem [shape: f32[32,64], index: 11, kind: input, shape index: {}]   ;;  %s4123_s12 = inlined_call_operand.vmem [shape: f32[1,64], index: 12, kind: input, shape index: {}]   ;;  %s4124_s13 = inlined_call_operand.vmem [shape: f32[32,32], index: 13, kind: input, shape index: {}]   ;;  %s4125_s14 = inlined_call_operand.vmem [shape: f32[1,32], index: 14, kind: input, shape index: {}]   ;;  %s4126_s15 = inlined_call_operand.vmem [shape: f32[32,64], index: 15, kind: input, shape index: {}]   ;;  %s4127_s16 = inlined_call_operand.vmem [shape: f32[1,64], index: 16, kind: input, shape index: {}]   ;;  %s4128_s17 = inlined_call_operand.vmem [shape: f32[64,32], index: 17, kind: input, shape index: {}]   ;;  %s4129_s18 = inlined_call_operand.vmem [shape: f32[1,32], index: 18, kind: input, shape index: {}]   ;;  %s4130_s19 = inlined_call_operand.hbm [shape: f32[2,8,32], index: 19, kind: output, shape index: {}]  }
   0x1   :  { %4153 = sst [smem:[#allocation9_spill]] %s4111_s0 }
   0x2   :  { %4154 = sst [smem:[#allocation10_spill]] %s4112_s1 }
   0x3   :  { %4155 = sst [smem:[#allocation11_spill]] %s4113_s2 }
   0x4   :  { %4156 = sst [smem:[#allocation12_spill]] %s4114_s3 }
   0x5   :  { %4157 = sst [smem:[#allocation13_spill]] %s4115_s4 }
   0x6   :  { %24 = vsyncpa [#allocation3], 0 }
   0x7   :  { %26 = vsyncpa [#allocation3 + $0x1], 0  ;;  %s3617_s0 = smov 0   ;;  %s3619_s30 = smov 0  }
   0x8   :  { %s3621_s20 = smov 0   ;;  %s3623_s21 = smov 0  }
   0x9 LB: > { %4158 = sst [smem:[#allocation5_spill]] %s3493_s20  ;;  %s3638_s1 = sadd.s32 4294967295, %s3497_s21   ;;  %s3497_s21 = sphi %s3623_s21, %s4183_s21   ;;  %s3493_s20 = sphi %s3621_s20, %s4185_s20   ;;  %s3489_s30 = sphi %s3619_s30, %s4187_s30   ;;  %s3485_s0 = sphi %s3617_s0, %s4186_s0  }
   0xa   : > { %s2904_s22 = sadd.s32 4294967294, %s3497_s21   ;;  %s3642_s2 = sadd.s32 1, %s3497_s21  }
   0xb   : > { %4159 = sst [smem:[#allocation6_spill]] %s3642_s2  ;;  %s453_s23 = sadd.s32 1, %s3493_s20 }
   0xc   : > { %s450_s24 = ssub.s32 %s3497_s21, %s3642_s2  ;;  %p463_p0 = scmp.ne.s32.totalorder %s3493_s20, %s3489_s30 }
   0xd   : > { %p451_p1 = scmp.eq.s32.totalorder %s450_s24, 0  ;;  %p464_p2 = scmp.eq.s32.totalorder %s3638_s1, 1 }
   0xe   : > { %p469_p3 = scmp.ne.s32.totalorder %s3489_s30, %s3485_s0  ;;  %p470_p4 = scmp.eq.s32.totalorder %s2904_s22, 1 }
   0xf   : > { %s3653_s25 = scalar_select %p451_p1, %s3493_s20, %s453_s23  }
  0x10   : > { %p3655_p5 = por %p464_p2, %p463_p0  ;;  %p3659_p6 = por %p470_p4, %p469_p3 }
  0x11   : > { %4160 = sst [smem:[#allocation7_spill]] %s3653_s25  ;;  %p2907_p7 = scmp.ge.s32.totalorder %s3497_s21, 1 }
  0x12   : > { %s4162_s26 = scalar_select %p3659_p6, 1, 0 }
  0x13   : > { %p557_p8 = scmp.lt.s32.totalorder %s3497_s21, 3 }
  0x14   : > { %4163 = sst [smem:[#allocation8_spill]] %s4162_s26 }
  0x15   : > { %p558_p9 = pnand %p2907_p7, %p557_p8 }
  0x16   : > { %s4164_s29 = sld [smem:[#allocation12_spill]] (!%p558_p9)  ;;  %p620_p10 = scmp.lt.s32.totalorder (!%p558_p9), %s3638_s1, 1  ;;  %v3499_v5 = vmov (!%p558_p9), 0.0   ;;  %v727_v6 = vld [vmem:[%s4116_s5] sm:$0xff] (!%p558_p9)  ;;  %v728_v7 = vld [vmem:[%s4116_s5 + $0x8] sm:$0xff] (!%p558_p9)  ;;  %vm3500_vm0 = vmmov (!%p558_p9), 0  }
  0x17   : > { %561 = sbr.rel (%p558_p9) target bundleno = 5789 (0x169d), region = 96  ;;  %720 = vmatprep.mubr.f32.mxu0 (!%p558_p9), %v3499_v5  ;;  %3057 = vmatprep.subr.mxu1 (!%p558_p9), %v3499_v5  ;;  %s4165_s23 = sld [smem:[#allocation11_spill]] (!%p558_p9)  ;;  %vm652_vm1 = vcmask (!%p558_p9), 130048   ;;  %v3227_v9 = vpack.c.bf16 (!%p558_p9), %v728_v7, %v727_v6  ;;  %v3501_v11 = vmov (!%p558_p9), 0.0|0.0   ;;  %v729_v12 = vld [vmem:[%s4116_s5 + $0x10] sm:$0xff] (!%p558_p9)  ;;  %v730_v13 = vld [vmem:[%s4116_s5 + $0x18] sm:$0xff] (!%p558_p9) }
  0x18   : > { %3059 = vmatprep.mubr.msk.f32.mxu1 (!%p558_p9), %vm3500_vm0, %v3499_v5  ;;  %v3230_v14 = vpack.c.bf16 (!%p558_p9), %v730_v13, %v729_v12  ;;  %vm738_vm2 = vcmask (!%p558_p9), 261120   ;;  %v2913_v18 = vld [vmem:[%s4117_s6] ss:$0 sm:$0xff] (!%p558_p9)  ;;  %s4151_s28 = smov (!%p558_p9), 96   ;;  %s4145_s22 = smov (!%p558_p9), 88   ;;  %vm815_vm3 = vcmask (!%p558_p9), 64512  }
  0x19   : > { %s4146_s20 = smov (!%p558_p9), 120   ;;  %s4142_s2 = smov (!%p558_p9), 80   ;;  %vm1490_vm4 = vcmask (!%p558_p9), 195584   ;;  %vm3891_vm5 = vmpackc.low (!%p558_p9), %vm815_vm3, %vm815_vm3  ;;  %vm2695_vm6 = vcmask (!%p558_p9), 523264  }
  0x1a   : > { %s4140_s26 = smov (!%p558_p9), 104   ;;  %s3510_s27 = smov (!%p558_p9), 56  }
  0x1b   : > { %s4167_s4 = sld [smem:[#allocation13_spill]] (!%p558_p9) }
  0x1c   : > { %v637_v0 = vld [vmem:[%s4164_s29 + $0x8] sm:$0xff] (!%p558_p9)  ;;  %v639_v1 = vld [vmem:[%s4164_s29 + $0x18] sm:$0xff] (!%p558_p9)  ;;  %v636_v2 = vld [vmem:[%s4164_s29] sm:$0xff] (!%p558_p9) }
  0x1d   : > { %v3222_v3 = vpack.c.bf16 (!%p558_p9), %v639_v1, %v637_v0  ;;  %v638_v4 = vld [vmem:[%s4164_s29 + $0x10] sm:$0xff] (!%p558_p9) }
  0x1e   : > { %v3224_v8 = vpack.c.bf16 %v638_v4, %v636_v2  ;;  %s3687_s25 = scalar_select %p620_p10, %s3638_s1, 1 }
  0x1f   : > { %3223 = vmatprep.subr.bf16.mxu0 %v3222_v3 }
  0x20   : > { %3225 = vmatpush1.bf16.msra.mxu0 %v3224_v8  ;;  %s631_s24 = scalar_lea.vmem %s4165_s23, %s3687_s25  ;;  %s2909_s29 = sshll.u32 %s3687_s25, 3 }
  0x21   : > { %v635_v10 = vld [vmem:[%s631_s24] sm:$0x1]  ;;  %3226 = vmatprep.subr.bf16.mxu0 %v3501_v11  ;;  %s4166_s23 = sld [smem:[#allocation9_spill]] }
  0x23   : > { %2912 = vmatmul.mubr.msk.f32.vlgmr.msra.gmra.mrb[0].mxu0 %vm652_vm1, %v635_v10  ;;  %v1493_v10 = vld [vmem:[%s4118_s7 + $0x8] sm:$0xff] }
  0x24   : > { %3228 = vmatpush3.bf16.msra.mxu0 %v3227_v9  ;;  %3049 = vmatprep.mubr.msk.f32.mxu0 %vm3500_vm0, %v3499_v5  ;;  %v1492_v9 = vld [vmem:[%s4118_s7] sm:$0xff] }
  0x25   : > { %3229 = vmatprep.subr.bf16.mxu0 %v3501_v11  ;;  %v3233_v13 = vpack.c.bf16 %v1493_v10, %v1492_v9 }
  0x27   : > { %s623_s24 = scalar_lea.vmem %s4166_s23, %s2909_s29  ;;  %s4137_s29 = smov 64  }
  0x28   : > { %3231 = vmatpush3.bf16.msra.mxu0 %v3230_v14  ;;  %v3710_v15 = vld [vmem:[%s623_s24] sm:$0xff]  ;;  %s4143_s23 = smov 112   ;;  %s4139_s24 = smov 72   ;;  %v1494_v14 = vld [vmem:[%s4118_s7 + $0x10] sm:$0xff] }
  0x29   : > { %3052 = vmatprep.subr.mxu0 %v3499_v5 }
  0x2b   : > { %3050 = vmatmul.mubr.msk.f32.vlgmr.msra.gmra.mrb[2].mxu0 %vm738_vm2, %v3710_v15 }
  0x2c   : > { %3054 = vmatprep.mubr.msk.f32.mxu0 %vm3500_vm0, %v3499_v5 }
  0xf6   : > { %v3717_v16 = vpop.f32.mrb[0].mxu0 }
  0xf7   : > { %v3719_v17 = vpop.f32.mrb[1].mxu0 }
  0xfe   : > { %v808_v19 = vpop.f32.mrb[2].mxu0 }
  0xff   : > { %v3724_v20 = vadd.f32 %v2913_v18, %v808_v19  ;;  %v3051_v21 = vpop.f32.mrb[3].mxu0  ;;  %v1495_v18 = vld [vmem:[%s4118_s7 + $0x18] sm:$0xff] }
 0x101   : > { %900 = vrot.lane.b32.xlu1 %v3724_v20, %s4137_s29  ;;  %813 = vrot.lane.b32.xlu0 %v3724_v20, %s4151_s28  ;;  %s3512_s29 = smov 40  }
 0x105   : > { %980 = vrot.lane.b32.xlu1 %v3724_v20, %s4145_s22  ;;  %s4148_s22 = smov 24  }
 0x109   : > { %978 = vrot.lane.b32.xlu1 %v3724_v20, %s4146_s20  ;;  %s2960_s20 = sshll.u32 %s3687_s25, 4  ;;  %s617_s25 = sand.u32 1, %s3489_s30  }
 0x10d   : > { %1146 = vrot.lane.b32.xlu1 %v3724_v20, %s4142_s2  ;;  %s4149_s2 = smov 16  }
 0x111   : > { %1144 = vrot.lane.b32.xlu1 %v3724_v20, %s4143_s23  ;;  %s4178_s23 = smov 8  }
 0x115   : > { %1312 = vrot.lane.b32.xlu1 %v3724_v20, %s4139_s24  ;;  %s4150_s24 = smov 8  }
 0x119   : > { %1310 = vrot.lane.b32.xlu1 %v3724_v20, %s4140_s26  ;;  %s4171_s26 = smov 120  }
 0x173   : > { %v901_v22 = vpop.permute.xlu1 %900  ;;  %v814_v23 = vpop.permute.xlu0 %813 }
 0x174   : > { %3053 = vmatpush3.xpose.msk.msra.mxu0 %vm815_vm3, %v814_v23  ;;  %3058 = vmatpush3.msra.mxu1 %v901_v22 }
 0x175   : > { %3067 = vmatprep.subr.mxu0 %v3499_v5  ;;  %3062 = vmatprep.subr.mxu1 %v3499_v5 }
 0x177   : > { %3055 = vmatmul.mubr.msk.f32.vlgmr.msra.gmra.mrb[4].mxu0 %vm815_vm3, %v3724_v20  ;;  %v981_v28 = vpop.permute.xlu1 %980 }
 0x178   : > { %3069 = vmatprep.mubr.msk.f32.mxu0 %vm3500_vm0, %v3499_v5 }
 0x17b   : > { %v979_v31 = vpop.permute.xlu1 %978 }
 0x17f   : > { %v1147_v34 = vpop.permute.xlu1 %1146 }
 0x183   : > { %v1145_v36 = vpop.permute.xlu1 %1144 }
 0x187   : > { %v1313_v37 = vpop.permute.xlu1 %1312 }
 0x18b   : > { %v1311_v38 = vpop.permute.xlu1 %1310 }
 0x24a   : > { %v886_v24 = vpop.f32.mrb[4].mxu0 }
 0x24b   : > { %v890_v25 = vmul.f32 0.35355338, %v886_v24  ;;  %v3056_v26 = vpop.f32.mrb[5].mxu0 }
 0x24d   : > { %v891_v27 = vsel %vm815_vm3, %v890_v25, -inf }
 0x24e   : > { %892 = vmax.xlane.f32.xlu0 %v891_v27 }
 0x264   : > { %1066 = vrot.lane.b32.xlu0 %v3724_v20, %s3510_s27  ;;  %s3511_s27 = smov 48  }
 0x2db   : > { %v893_v29 = vpop.xlane.xlu0 %892 }
 0x2dc   : > { %v894_v30 = vsub.f32 %v890_v25, %v893_v29 }
 0x2de   : > { %v895_v32 = vmul.f32 1.442695, %v894_v30 }
 0x2df   : > { %v1067_v33 = vpop.permute.xlu0 %1066 }
 0x2e0   : > { %3395 = vpow2.f32 %v895_v32  ;;  %3068 = vmatpush3.msra.mxu0 %v1067_v33 }
 0x2e1   : > { %3077 = vmatprep.subr.mxu0 %v3499_v5 }
 0x2ea   : > { %v3752_v35 = vpop.eup %3395 }
 0x2eb   : > { %3060 = vmatmul.mubr.msk.f32.vlgmr.msra.gmra.mrb[0].mxu1 %vm815_vm3, %v3752_v35  ;;  %v897_v7 = vsel %vm815_vm3, %v3752_v35, 0.0 }
 0x2ec   : > { %3063 = vmatpush3.xpose.msk.msra.mxu1 %vm815_vm3, %v981_v28  ;;  %3064 = vmatprep.mubr.msk.f32.mxu1 %vm3500_vm0, %v3499_v5 }
 0x2ed   : > { %3072 = vmatprep.subr.mxu1 %v3499_v5 }
 0x2ef   : > { %3065 = vmatmul.mubr.msk.f32.vlgmr.msra.gmra.mrb[2].mxu1 %vm815_vm3, %v979_v31 }
 0x2f0   : > { %3073 = vmatpush3.xpose.msk.msra.mxu1 %vm815_vm3, %v1147_v34  ;;  %3074 = vmatprep.mubr.msk.f32.mxu1 %vm3500_vm0, %v3499_v5 }
 0x2f1   : > { %3082 = vmatprep.subr.mxu1 %v3499_v5 }
 0x2f3   : > { %3075 = vmatmul.mubr.msk.f32.vlgmr.msra.gmra.mrb[4].mxu1 %vm815_vm3, %v1145_v36 }
 0x2f4   : > { %3083 = vmatpush3.xpose.msk.msra.mxu1 %vm815_vm3, %v1313_v37  ;;  %3084 = vmatprep.mubr.msk.f32.mxu1 %vm3500_vm0, %v3499_v5 }
 0x2f5   : > { %3232 = vmatprep.subr.bf16.mxu1 %v3501_v11 }
 0x2f7   : > { %3085 = vmatmul.mubr.msk.f32.vlgmr.msra.gmra.mrb[6].mxu1 %vm815_vm3, %v1311_v38 }
 0x2f8   : > { %3100 = vmatprep.mubr.msk.f32.mxu1 %vm3500_vm0, %v3499_v5  ;;  %3234 = vmatpush3.bf16.msra.mxu1 %v3233_v13 }
 0x2f9   : > { %3235 = vmatprep.subr.bf16.mxu1 %v3501_v11 }
 0x3be   : > { %v3773_v39 = vpop.f32.mrb[0].mxu1 }
 0x3bf   : > { %v3061_v40 = vpop.f32.mrb[1].mxu1 }
 0x3c2   : > { %v1052_v41 = vpop.f32.mrb[2].mxu1 }
 0x3c3   : > { %v1056_v42 = vmul.f32 0.35355338, %v1052_v41  ;;  %v3066_v43 = vpop.f32.mrb[3].mxu1 }
 0x3c4   : > { %v2927_v43 = vld [vmem:[%s4119_s8] ss:$0 sm:$0xff] }
 0x3c5   : > { %v1057_v44 = vsel %vm815_vm3, %v1056_v42, -inf }
 0x3c6   : > { %1058 = vmax.xlane.f32.xlu1 %v1057_v44  ;;  %v1218_v45 = vpop.f32.mrb[4].mxu1 }
 0x3c7   : > { %v1222_v46 = vmul.f32 0.35355338, %v1218_v45  ;;  %v3076_v47 = vpop.f32.mrb[5].mxu1 }
 0x3c9   : > { %v1223_v48 = vsel %vm815_vm3, %v1222_v46, -inf }
 0x3ca   : > { %1224 = vmax.xlane.f32.xlu0 %v1223_v48  ;;  %v1384_v49 = vpop.f32.mrb[6].mxu1  ;;  %v642_v48 = vlaneseq }
 0x3cb   : > { %v1388_v50 = vmul.f32 0.35355338, %v1384_v49  ;;  %v3086_v51 = vpop.f32.mrb[7].mxu1 }
 0x3cc   : > { %v3822_v49 = vshrl.u32 %v642_v48, 7  ;;  %v3830_v51 = vld [vmem:[%s4167_s4] sm:$0x3]  ;;  %s4181_s4 = smov 64  }
 0x3cd   : > { %v1389_v52 = vsel %vm815_vm3, %v1388_v50, -inf }
 0x3ce   : > { %1390 = vmax.xlane.f32.xlu0 %v1389_v52 }
 0x3d7   : > { %1232 = vrot.lane.b32.xlu1 %v3724_v20, %s3511_s27  ;;  %s4176_s27 = smov 104  }
 0x3e4   : > { %1398 = vrot.lane.b32.xlu0 %v3724_v20, %s3512_s29  ;;  %v3236_v20 = vpack.c.bf16 %v1495_v18, %v1494_v14 }
 0x3e6   : > { %3237 = vmatpush3.bf16.msra.mxu1 %v3236_v20 }
 0x453   : > { %v1059_v53 = vpop.xlane.xlu1 %1058 }
 0x454   : > { %v1060_v54 = vsub.f32 %v1056_v42, %v1059_v53 }
 0x456   : > { %v1061_v55 = vmul.f32 1.442695, %v1060_v54  ;;  %v1685_v54 = vld [vmem:[%s4122_s11] sm:$0xff] }
 0x457   : > { %v1225_v56 = vpop.xlane.xlu0 %1224  ;;  %v1233_v63 = vpop.permute.xlu1 %1232 }
 0x458   : > { %3397 = vpow2.f32 %v1061_v55  ;;  %v1226_v57 = vsub.f32 %v1222_v46, %v1225_v56  ;;  %v1686_v55 = vld [vmem:[%s4122_s11 + $0x8] sm:$0xff] }
 0x459   : > { %v3244_v56 = vpack.c.bf16 %v1686_v55, %v1685_v54 }
 0x45a   : > { %v1227_v58 = vmul.f32 1.442695, %v1226_v57 }
 0x45b   : > { %v1391_v59 = vpop.xlane.xlu0 %1390  ;;  %3245 = vmatprep.subr.bf16.mxu1 %v3244_v56 }
 0x45c   : > { %3399 = vpow2.f32 %v1227_v58  ;;  %v1392_v60 = vsub.f32 %v1388_v50, %v1391_v59  ;;  %v3825_v50 = vsub.s32 0, %v3822_v49 }
 0x45e   : > { %v1393_v61 = vmul.f32 1.442695, %v1392_v60  ;;  %v645_v52 = vrot.slane %v3830_v51, %v3825_v50 }
 0x45f   : > { %v1399_v2 = vpop.permute.xlu0 %1398 }
 0x460   : > { %3401 = vpow2.f32 %v1393_v61  ;;  %v723_v53 = vadd.f32 %v3717_v16, %v645_v52  ;;  %v1687_v61 = vld [vmem:[%s4122_s11 + $0x10] sm:$0xff] }
 0x462   : > { %v3398_v62 = vpop.eup %3397 }
 0x463   : > { %3070 = vmatmul.mubr.msk.f32.vlgmr.msra.gmra.mrb[6].mxu0 %vm815_vm3, %v3398_v62  ;;  %v1063_v0 = vsel %vm815_vm3, %v3398_v62, 0.0  ;;  %v1688_v62 = vld [vmem:[%s4122_s11 + $0x18] sm:$0xff] }
 0x464   : > { %3078 = vmatpush3.msra.mxu0 %v1233_v63  ;;  %1064 = vadd.xlane.f32.xlu0 %v1063_v0  ;;  %v3248_v63 = vpack.c.bf16 %v1688_v62, %v1687_v61 }
 0x465   : > { %3079 = vmatprep.mubr.msk.f32.mxu0 %vm3500_vm0, %v3499_v5  ;;  %3087 = vmatprep.subr.mxu0 %v3499_v5 }
 0x466   : > { %v3400_v1 = vpop.eup %3399 }
 0x467   : > { %3080 = vmatmul.mubr.msk.f32.vlgmr.msra.gmra.mrb[8].mxu0 %vm815_vm3, %v3400_v1  ;;  %v1229_v3 = vsel %vm815_vm3, %v3400_v1, 0.0 }
 0x468   : > { %3088 = vmatpush3.msra.mxu0 %v1399_v2  ;;  %1230 = vadd.xlane.f32.xlu1 %v1229_v3  ;;  %v1601_v2 = vld [vmem:[%s4120_s9] sm:$0xff]  ;;  %v1602_v3 = vld [vmem:[%s4120_s9 + $0x8] sm:$0xff] }
 0x469   : > { %3089 = vmatprep.mubr.msk.f32.mxu0 %vm3500_vm0, %v3499_v5  ;;  %3238 = vmatprep.subr.bf16.mxu0 %v3501_v11 }
 0x46a   : > { %v3402_v4 = vpop.eup %3401 }
 0x46b   : > { %3090 = vmatmul.mubr.msk.f32.vlgmr.msra.gmra.mrb[10].mxu0 %vm815_vm3, %v3402_v4  ;;  %v1395_v6 = vsel %vm815_vm3, %v3402_v4, 0.0  ;;  %v3239_v4 = vpack.c.bf16 %v1602_v3, %v1601_v2 }
 0x46c   : > { %1396 = vadd.xlane.f32.xlu0 %v1395_v6  ;;  %3111 = vmatprep.mubr.msk.f32.mxu0 %vm3500_vm0, %v3499_v5  ;;  %v1603_v6 = vld [vmem:[%s4120_s9 + $0x10] sm:$0xff] }
 0x46d   : > { %3240 = vmatpush3.bf16.msra.mxu0 %v3239_v4 }
 0x46e   : > { %3241 = vmatprep.subr.bf16.mxu0 %v3501_v11 }
 0x470   : > { %898 = vadd.xlane.f32.xlu0 %v897_v7  ;;  %v1604_v7 = vld [vmem:[%s4120_s9 + $0x18] sm:$0xff] }
 0x4f1   : > { %v1065_v8 = vpop.xlane.xlu0 %1064 }
 0x4f2   : > { %3403 = vrcp.f32 %v1065_v8  ;;  %v3242_v8 = vpack.c.bf16 %v1604_v7, %v1603_v6 }
 0x4f4   : > { %3243 = vmatpush3.bf16.msra.mxu0 %v3242_v8 }
 0x4f5   : > { %v1231_v12 = vpop.xlane.xlu1 %1230  ;;  %3252 = vmatprep.subr.bf16.mxu0 %v3501_v11 }
 0x4f6   : > { %3405 = vrcp.f32 %v1231_v12 }
 0x4f9   : > { %v1397_v19 = vpop.xlane.xlu0 %1396 }
 0x4fa   : > { %3407 = vrcp.f32 %v1397_v19 }
 0x4fc   : > { %v3404_v21 = vpop.eup %3403 }
 0x4fd   : > { %v899_v33 = vpop.xlane.xlu0 %898 }
 0x4fe   : > { %3409 = vrcp.f32 %v899_v33 }
 0x500   : > { %v3406_v25 = vpop.eup %3405 }
 0x504   : > { %v3408_v29 = vpop.eup %3407 }
 0x508   : > { %v3410_v34 = vpop.eup %3409 }
 0x509   : > { %v977_v36 = vmul.f32 %v3410_v34, %v3773_v39 }
 0x536   : > { %v1138_v22 = vpop.f32.mrb[6].mxu0 }
 0x537   : > { %v1143_v23 = vmul.f32 %v3404_v21, %v1138_v22  ;;  %v3071_v24 = vpop.f32.mrb[7].mxu0  ;;  %v2931_v21 = vld [vmem:[%s4123_s12] ss:$0 sm:$0xff] }
 0x539   : > { %1477 = vrot.lane.b32.xlu0 %v1143_v23, %s4150_s24  ;;  %s4168_s24 = sld [smem:[#allocation10_spill]] }
 0x53a   : > { %v1304_v26 = vpop.f32.mrb[8].mxu0 }
 0x53b   : > { %v1309_v27 = vmul.f32 %v3406_v25, %v1304_v26  ;;  %v3081_v28 = vpop.f32.mrb[9].mxu0 }
 0x53d   : > { %1481 = vrot.lane.b32.xlu1 %v1309_v27, %s4149_s2  ;;  %s4174_s2 = smov 96  }
 0x53e   : > { %v1470_v30 = vpop.f32.mrb[10].mxu0 }
 0x53f   : > { %v1475_v31 = vmul.f32 %v3408_v29, %v1470_v30  ;;  %v3091_v32 = vpop.f32.mrb[11].mxu0 }
 0x540   : > { %v2929_v32 = vld [vmem:[%s4121_s10] ss:$0 sm:$0xff] }
 0x541   : > { %1485 = vrot.lane.b32.xlu0 %v1475_v31, %s4148_s22  ;;  %s4172_s22 = smov 88  }
 0x5ab   : > { %v1478_v35 = vpop.permute.xlu0 %1477 }
 0x5ac   : > { %v1488_v38 = vsel %vm815_vm3, %v977_v36, %v1478_v35 }
 0x5af   : > { %v1482_v37 = vpop.permute.xlu1 %1481 }
 0x5b0   : > { %v1489_v40 = vsel %vm652_vm1, %v1488_v38, %v1482_v37 }
 0x5b3   : > { %v1486_v41 = vpop.permute.xlu0 %1485 }
 0x5b4   : > { %v1491_v42 = vsel %vm1490_vm4, %v1489_v40, %v1486_v41 }
 0x5b5   : > { %3101 = vmatmul.mubr.msk.f32.vlgmr.msra.gmra.mrb[8].mxu1 %vm738_vm2, %v1491_v42 }
 0x5b6   : > { %3247 = vmatpush3.bf16.msra.mxu1 %v3244_v56 }
 0x5b7   : > { %3249 = vmatprep.subr.bf16.mxu1 %v3248_v63 }
 0x5ba   : > { %3251 = vmatpush3.bf16.msra.mxu1 %v3248_v63 }
 0x5bb   : > { %3256 = vmatprep.subr.bf16.mxu1 %v3501_v11 }
 0x688   : > { %v1572_v44 = vpop.f32.mrb[8].mxu1 }
 0x689   : > { %v1573_v45 = vadd.f32 %v2927_v43, %v1572_v44  ;;  %v3102_v46 = vpop.f32.mrb[9].mxu1 }
 0x68b   : > { %v1576_v39 = vadd.f32 %v1573_v45, %v3710_v15  ;;  %v3836_v15 = vrot.slane %v723_v53, %v3825_v50 }
 0x68d   : > { %v1577_v47 = vsel %vm738_vm2, %v1576_v39, 0.0 }
 0x68e   : > { %1578 = vadd.xlane.f32.xlu0 %v1577_v47 }
 0x6a4   : > { %1597 = vrot.lane.b32.xlu0 %v3836_v15, %s4151_s28  ;;  %s628_s28 = scalar_lea.vmem %s4168_s24, %s2960_s20  ;;  %s4173_s24 = smov 112  }
 0x6a5   : > { %v633_v0 = vld [vmem:[%s628_s28] sm:$0xff]  ;;  %v634_v1 = vld [vmem:[%s628_s28 + $0x8] sm:$0xff]  ;;  %s4175_s28 = smov 80   ;;  %s4177_s20 = smov 72  }
 0x6a6   : > { %3122 = vmatprep.mubr.msk.f32.mxu1 %vm738_vm2, %v633_v0 }
 0x6a7   : > { %3123 = vmatmul.mubr.msk.f32.vlgmr.msra.gmra.mrb[10].mxu1 %vm738_vm2, %v634_v1 }
 0x6a8   : > { %3136 = vmatprep.mubr.msk.f32.mxu1 %vm3500_vm0, %v3499_v5 }
 0x71b   : > { %v1579_v57 = vpop.xlane.xlu0 %1578 }
 0x71c   : > { %v1581_v16 = vmul.f32 0.03125, %v1579_v57 }
 0x71e   : > { %v1582_v58 = vsub.f32 %v1576_v39, %v1581_v16 }
 0x71f   : > { %v3877_v19 = vpop.permute.xlu0 %1597 }
 0x720   : > { %v1583_v59 = vmul.f32 %v1582_v58, %v1582_v58 }
 0x722   : > { %v1584_v60 = vsel %vm738_vm2, %v1583_v59, 0.0 }
 0x723   : > { %1585 = vadd.xlane.f32.xlu1 %v1584_v60 }
 0x77a   : > { %v3124_v22 = vpop.f32.mrb[10].mxu1 }
 0x77b   : > { %v1774_v23 = vadd.f32 %v3124_v22, %v2931_v21  ;;  %v1768_v24 = vpop.f32.mrb[11].mxu1 }
 0x77c   : > { %v1769_v25 = vadd.f32 %v2931_v21, %v1768_v24 }
 0x77e   : > { %v3895_v27 = vpack.i.bf16 %v1774_v23, %v1769_v25  ;;  %v3253_v28 = vpack.c.bf16 %v1774_v23, %v1769_v25 }
 0x780   : > { %3361 = vrot.lane.b32.xlu1 %v3895_v27, %s4171_s26 }
 0x7b0   : > { %v1586_v9 = vpop.xlane.xlu1 %1585 }
 0x7b1   : > { %v1587_v10 = vmul.f32 0.03125, %v1586_v9 }
 0x7b3   : > { %v1588_v12 = vadd.f32 1e-05, %v1587_v10 }
 0x7b5   : > { %3411 = vrsqrt.f32 %v1588_v12 }
 0x7bf   : > { %v3412_v13 = vpop.eup %3411 }
 0x7c0   : > { %v1590_v14 = vmul.f32 %v3412_v13, %v1582_v58 }
 0x7c2   : > { %v1595_v18 = vmul.f32 %v3836_v15, %v1590_v14 }
 0x7c4   : > { %v3880_v20 = vadd.f32 %v3877_v19, %v1595_v18 }
 0x7c6   : > { %3112 = vmatmul.mubr.msk.f32.vlgmr.msra.gmra.mrb[12].mxu0 %vm738_vm2, %v3880_v20 }
 0x7c7   : > { %3129 = vmatprep.mubr.msk.f32.mxu0 %vm3500_vm0, %v3499_v5  ;;  %3255 = vmatpush3.bf16.xpose.msk.msra.mxu0 %vm3891_vm5, %v3253_v28 }
 0x7c8   : > { %3259 = vmatprep.subr.bf16.mxu0 %v3501_v11 }
 0x7f2   : > { %v3362_v29 = vpop.permute.xlu1 %3361 }
 0x7f3   : > { %v3364_v30 = vunpack.i.h.bf16 %v3362_v29  ;;  %v3363_v31 = vunpack.i.l.bf16 %v3362_v29 }
 0x7f5   : > { %v3260_v34 = vpack.c.bf16 %v3364_v30, %v3363_v31 }
 0x899   : > { %v1681_v33 = vpop.f32.mrb[12].mxu0 }
 0x89a   : > { %v1682_v35 = vadd.f32 %v2929_v32, %v1681_v33  ;;  %v3113_v36 = vpop.f32.mrb[13].mxu0 }
 0x89c   : > { %1947 = vrot.lane.b32.xlu0 %v1682_v35, %s4171_s26  ;;  %3130 = vmatmul.mubr.msk.f32.vlgmr.msra.gmra.mrb[14].mxu0 %vm815_vm3, %v1682_v35  ;;  %s4179_s26 = smov 16  }
 0x89d   : > { %3262 = vmatpush3.bf16.xpose.msk.msra.mxu0 %vm3891_vm5, %v3260_v34  ;;  %3143 = vmatprep.mubr.msk.f32.mxu0 %vm3500_vm0, %v3499_v5 }
 0x89e   : > { %3270 = vmatprep.subr.bf16.mxu0 %v3501_v11 }
 0x90e   : > { %v1948_v37 = vpop.permute.xlu0 %1947 }
 0x90f   : > { %3144 = vmatmul.mubr.msk.f32.vlgmr.msra.gmra.mrb[16].mxu0 %vm815_vm3, %v1948_v37 }
 0x910   : > { %3164 = vmatprep.mubr.msk.f32.mxu0 %vm3500_vm0, %v3499_v5 }
 0x96f   : > { %v1852_v38 = vpop.f32.mrb[14].mxu0 }
 0x970   : > { %v1856_v40 = vmul.f32 0.35355338, %v1852_v38  ;;  %v3131_v41 = vpop.f32.mrb[15].mxu0 }
 0x972   : > { %v1857_v42 = vsel %vm652_vm1, %v1856_v40, -inf }
 0x973   : > { %1858 = vmax.xlane.f32.xlu1 %v1857_v42 }
 0x984   : > { %3371 = vrot.lane.b32.xlu1 %v3895_v27, %s4172_s22  ;;  %s2908_s22 = sshll.u32 %s617_s25, 3 }
 0x988   : > { %3376 = vrot.lane.b32.xlu1 %v3895_v27, %s4173_s24 }
 0x9e2   : > { %v2025_v43 = vpop.f32.mrb[16].mxu0 }
 0x9e3   : > { %v2029_v44 = vmul.f32 0.35355338, %v2025_v43  ;;  %v3145_v45 = vpop.f32.mrb[17].mxu0 }
 0x9e5   : > { %v2030_v46 = vsel %vm652_vm1, %v2029_v44, -inf }
 0x9e6   : > { %2031 = vmax.xlane.f32.xlu0 %v2030_v46 }
 0x9fc   : > { %3366 = vrot.lane.b32.xlu0 %v3895_v27, %s4174_s2 }
 0xa00   : > { %2120 = vrot.lane.b32.xlu0 %v1682_v35, %s4173_s24  ;;  %v1859_v39 = vpop.xlane.xlu1 %1858  ;;  %s2957_s24 = sshll.u32 %s3638_s1, 7  ;;  %s3516_s1 = smov [#allocation2]  }
 0xa01   : > { %v1860_v47 = vsub.f32 %v1856_v40, %v1859_v39  ;;  %s3439_s29 = sshll.u32 %s3516_s1, 4  ;;  %s3440_s29 = int_to_ptr.vmem [resolvable:$false] %s3439_s29 }
 0xa03   : > { %v1861_v48 = vmul.f32 1.442695, %v1860_v47 }
 0xa04   : > { %3381 = vrot.lane.b32.xlu0 %v3895_v27, %s4175_s28  ;;  %v3372_v55 = vpop.permute.xlu1 %3371  ;;  %s619_s28 = scalar_lea.vmem [#allocation2], %s2908_s22  ;;  %s3441_s22 = scalar_lea.vmem %s3440_s29, 256 }
 0xa05   : > { %3413 = vpow2.f32 %v1861_v48  ;;  %v3374_v58 = vunpack.i.h.bf16 %v3372_v55  ;;  %v3373_v59 = vunpack.i.l.bf16 %v3372_v55 }
 0xa07   : > { %v3264_v63 = vpack.c.bf16 %v3374_v58, %v3373_v59  ;;  %v2481_v59 = vld [vmem:[%s4124_s13] sm:$0xff] }
 0xa08   : > { %3386 = vrot.lane.b32.xlu0 %v3895_v27, %s4176_s27  ;;  %v3377_v1 = vpop.permute.xlu1 %3376 }
 0xa09   : > { %v3379_v7 = vunpack.i.h.bf16 %v3377_v1  ;;  %v3378_v8 = vunpack.i.l.bf16 %v3377_v1 }
 0xa0b   : > { %v3267_v9 = vpack.c.bf16 %v3379_v7, %v3378_v8 }
 0xa0c   : > { %2293 = vrot.lane.b32.xlu0 %v1682_v35, %s4176_s27  ;;  %s2824_s27 = sshll.u32 %s619_s28, 4  ;;  %s4070_s27 = int_to_ptr.vmem [resolvable:$true] %s2824_s27 }
 0xa0d   : > { %p3442_p0 = scmp.lt.s32.totalorder %s4070_s27, %s3440_s29 }
 0xa0f   : > { %v3930_v62 = vpop.eup %3413 }
 0xa10   : > { %v1863_v46 = vsel %vm652_vm1, %v3930_v62, 0.0 }
 0xa73   : > { %v2032_v52 = vpop.xlane.xlu0 %2031 }
 0xa74   : > { %v2033_v53 = vsub.f32 %v2029_v44, %v2032_v52 }
 0xa76   : > { %v2034_v54 = vmul.f32 1.442695, %v2033_v53 }
 0xa77   : > { %v3367_v56 = vpop.permute.xlu0 %3366 }
 0xa78   : > { %3415 = vpow2.f32 %v2034_v54  ;;  %v3369_v57 = vunpack.i.h.bf16 %v3367_v56  ;;  %v3368_v16 = vunpack.i.l.bf16 %v3367_v56 }
 0xa7a   : > { %v3257_v60 = vpack.c.bf16 %v3369_v57, %v3368_v16 }
 0xa7b   : > { %v2121_v61 = vpop.permute.xlu0 %2120 }
 0xa7c   : > { %3258 = vmatpush3.bf16.msra.mxu1 %v3257_v60  ;;  %v2482_v60 = vld [vmem:[%s4124_s13 + $0x8] sm:$0xff] }
 0xa7d   : > { %3263 = vmatprep.subr.bf16.mxu1 %v3501_v11 }
 0xa7f   : > { %v3382_v0 = vpop.permute.xlu0 %3381  ;;  %3137 = vmatmul.mubr.msk.f32.vlgmr.msra.gmra.mrb[12].mxu1 %vm652_vm1, %v3930_v62  ;;  %v3281_v62 = vpack.c.bf16 %v2482_v60, %v2481_v59 }
 0xa80   : > { %v3384_v2 = vunpack.i.h.bf16 %v3382_v0  ;;  %v3383_v3 = vunpack.i.l.bf16 %v3382_v0  ;;  %3265 = vmatpush3.bf16.msra.mxu1 %v3264_v63  ;;  %3150 = vmatprep.mubr.msk.f32.mxu1 %vm3500_vm0, %v3499_v5  ;;  %v2484_v63 = vld [vmem:[%s4124_s13 + $0x18] sm:$0xff] }
 0xa81   : > { %3266 = vmatprep.subr.bf16.mxu1 %v3501_v11 }
 0xa82   : > { %v3416_v4 = vpop.eup %3415  ;;  %v3271_v6 = vpack.c.bf16 %v3384_v2, %v3383_v3 }
 0xa83   : > { %3151 = vmatmul.mubr.msk.f32.vlgmr.msra.gmra.mrb[14].mxu1 %vm652_vm1, %v3416_v4  ;;  %v3387_v33 = vpop.permute.xlu0 %3386  ;;  %v2036_v26 = vsel %vm652_vm1, %v3416_v4, 0.0 }
 0xa84   : > { %3272 = vmatpush3.bf16.msra.mxu0 %v3271_v6  ;;  %3157 = vmatprep.mubr.msk.f32.mxu1 %vm3500_vm0, %v3499_v5  ;;  %v3389_v34 = vunpack.i.h.bf16 %v3387_v33  ;;  %v3388_v35 = vunpack.i.l.bf16 %v3387_v33 }
 0xa85   : > { %3273 = vmatprep.subr.bf16.mxu0 %v3501_v11 }
 0xa86   : > { %v3274_v37 = vpack.c.bf16 %v3389_v34, %v3388_v35 }
 0xa89   : > { %3269 = vmatpush3.bf16.xpose.msk.msra.mxu1 %vm3891_vm5, %v3267_v9 }
 0xa8a   : > { %3277 = vmatprep.subr.bf16.mxu1 %v3501_v11 }
 0xa90   : > { %3158 = vmatmul.mubr.msk.f32.vlgmr.msra.gmra.mrb[16].mxu1 %vm815_vm3, %v2121_v61  ;;  %v2483_v61 = vld [vmem:[%s4124_s13 + $0x10] sm:$0xff] }
 0xa91   : > { %3178 = vmatprep.mubr.msk.f32.mxu1 %vm3500_vm0, %v3499_v5  ;;  %v3284_v0 = vpack.c.bf16 %v2484_v63, %v2483_v61 }
 0xb52   : > { %v3947_v10 = vpop.f32.mrb[12].mxu1 }
 0xb53   : > { %v3138_v12 = vpop.f32.mrb[13].mxu1 }
 0xb56   : > { %v2114_v13 = vpop.f32.mrb[14].mxu1 }
 0xb57   : > { %v3152_v14 = vpop.f32.mrb[15].mxu1 }
 0xb63   : > { %v2198_v18 = vpop.f32.mrb[16].mxu1 }
 0xb64   : > { %v2202_v21 = vmul.f32 0.35355338, %v2198_v18  ;;  %v3159_v22 = vpop.f32.mrb[17].mxu1 }
 0xb66   : > { %v2203_v23 = vsel %vm652_vm1, %v2202_v21, -inf }
 0xb67   : > { %2204 = vmax.xlane.f32.xlu1 %v2203_v23  ;;  %v2950_v23 = vld [vmem:[%s4125_s14] ss:$0 sm:$0xff] }
 0xb78   : > { %3391 = vrot.lane.b32.xlu1 %v3895_v27, %s4177_s20  ;;  %v2294_v27 = vpop.permute.xlu0 %2293 }
 0xbf4   : > { %v2205_v24 = vpop.xlane.xlu1 %2204 }
 0xbf5   : > { %v2206_v25 = vsub.f32 %v2202_v21, %v2205_v24 }
 0xbf7   : > { %v2207_v28 = vmul.f32 1.442695, %v2206_v25 }
 0xbf8   : > { %v3392_v29 = vpop.permute.xlu1 %3391 }
 0xbf9   : > { %3417 = vpow2.f32 %v2207_v28  ;;  %v3394_v30 = vunpack.i.h.bf16 %v3392_v29  ;;  %v3393_v31 = vunpack.i.l.bf16 %v3392_v29 }
 0xbfb   : > { %v3278_v32 = vpack.c.bf16 %v3394_v30, %v3393_v31 }
 0xbfd   : > { %3279 = vmatpush3.bf16.msra.mxu1 %v3278_v32 }
 0xbfe   : > { %3280 = vmatprep.subr.bf16.mxu1 %v3501_v11 }
 0xc03   : > { %v3418_v36 = vpop.eup %3417 }
 0xc04   : > { %3165 = vmatmul.mubr.msk.f32.vlgmr.msra.gmra.mrb[18].mxu0 %vm652_vm1, %v3418_v36  ;;  %v2209_v45 = vsel %vm652_vm1, %v3418_v36, 0.0 }
 0xc05   : > { %3276 = vmatpush3.bf16.xpose.msk.msra.mxu0 %vm3891_vm5, %v3274_v37  ;;  %3171 = vmatprep.mubr.msk.f32.mxu0 %vm3500_vm0, %v3499_v5  ;;  %v2585_v37 = vld [vmem:[%s4126_s15] sm:$0xff] }
 0xc06   : > { %3286 = vmatprep.subr.bf16.mxu0 %v3501_v11 }
 0xc0c   : > { %3172 = vmatmul.mubr.msk.f32.vlgmr.msra.gmra.mrb[20].mxu0 %vm815_vm3, %v2294_v27  ;;  %v2587_v27 = vld [vmem:[%s4126_s15 + $0x10] sm:$0xff] }
 0xc0d   : > { %3200 = vmatprep.mubr.msk.f32.mxu0 %vm3500_vm0, %v3499_v5 }
 0xcd7   : > { %v2287_v38 = vpop.f32.mrb[18].mxu0 }
 0xcd8   : > { %v3166_v40 = vpop.f32.mrb[19].mxu0 }
 0xcd9   : > { %v2588_v40 = vld [vmem:[%s4126_s15 + $0x18] sm:$0xff] }
 0xcdf   : > { %v2371_v41 = vpop.f32.mrb[20].mxu0 }
 0xce0   : > { %v2375_v42 = vmul.f32 0.35355338, %v2371_v41  ;;  %v3173_v43 = vpop.f32.mrb[21].mxu0  ;;  %v3290_v41 = vpack.c.bf16 %v2588_v40, %v2587_v27 }
 0xce2   : > { %v2376_v44 = vsel %vm652_vm1, %v2375_v42, -inf }
 0xce3   : > { %2377 = vmax.xlane.f32.xlu0 %v2376_v44 }
 0xce7   : > { %2037 = vadd.xlane.f32.xlu0 %v2036_v26 }
 0xceb   : > { %2210 = vadd.xlane.f32.xlu0 %v2209_v45 }
 0xcef   : > { %1864 = vadd.xlane.f32.xlu0 %v1863_v46 }
 0xd70   : > { %v2378_v39 = vpop.xlane.xlu0 %2377 }
 0xd71   : > { %v2379_v47 = vsub.f32 %v2375_v42, %v2378_v39  ;;  %v2680_v39 = vld [vmem:[%s4128_s17] sm:$0xff] }
 0xd73   : > { %v2380_v48 = vmul.f32 1.442695, %v2379_v47  ;;  %v2681_v47 = vld [vmem:[%s4128_s17 + $0x8] sm:$0xff] }
 0xd74   : > { %v2038_v52 = vpop.xlane.xlu0 %2037 }
 0xd75   : > { %3419 = vpow2.f32 %v2380_v48  ;;  %v3293_v48 = vpack.c.bf16 %v2681_v47, %v2680_v39 }
 0xd76   : > { %3421 = vrcp.f32 %v2038_v52 }
 0xd78   : > { %v2211_v53 = vpop.xlane.xlu0 %2210 }
 0xd79   : > { %3423 = vrcp.f32 %v2211_v53  ;;  %v2684_v53 = vld [vmem:[%s4128_s17 + $0x20] sm:$0xff] }
 0xd7c   : > { %v1865_v7 = vpop.xlane.xlu0 %1864 }
 0xd7f   : > { %v3420_v54 = vpop.eup %3419 }
 0xd80   : > { %v3422_v55 = vpop.eup %3421  ;;  %3179 = vmatmul.mubr.msk.f32.vlgmr.msra.gmra.mrb[18].mxu1 %vm652_vm1, %v3420_v54  ;;  %v2382_v56 = vsel %vm652_vm1, %v3420_v54, 0.0  ;;  %v2685_v54 = vld [vmem:[%s4128_s17 + $0x28] sm:$0xff] }
 0xd81   : > { %2383 = vadd.xlane.f32.xlu1 %v2382_v56  ;;  %v2119_v57 = vmul.f32 %v3422_v55, %v2114_v13  ;;  %3189 = vmatprep.mubr.msk.f32.mxu1 %vm3500_vm0, %v3499_v5  ;;  %v3299_v55 = vpack.c.bf16 %v2685_v54, %v2684_v53  ;;  %v2686_v56 = vld [vmem:[%s4128_s17 + $0x30] sm:$0xff] }
 0xd82   : > { %3282 = vmatpush3.bf16.msra.mxu1 %v3281_v62 }
 0xd83   : > { %v3424_v16 = vpop.eup %3423  ;;  %2467 = vrot.lane.b32.xlu0 %v2119_v57, %s4178_s23  ;;  %3283 = vmatprep.subr.bf16.mxu1 %v3501_v11  ;;  %s4180_s23 = smov 24   ;;  %v2687_v57 = vld [vmem:[%s4128_s17 + $0x38] sm:$0xff] }
 0xd84   : > { %v2292_v58 = vmul.f32 %v3424_v16, %v2287_v38  ;;  %v3302_v16 = vpack.c.bf16 %v2687_v57, %v2686_v56 }
 0xd86   : > { %3285 = vmatpush3.bf16.msra.mxu1 %v3284_v0 }
 0xd87   : > { %2471 = vrot.lane.b32.xlu0 %v2292_v58, %s4179_s26  ;;  %3292 = vmatprep.subr.bf16.mxu1 %v3501_v11  ;;  %v2952_v58 = vld [vmem:[%s4127_s16] ss:$0 sm:$0xff]  ;;  %s3435_s26 = scalar_lea.vmem %s4070_s27, 128 }
 0xd88   : > { %p3436_p11 = scmp.ne.s32.totalorder %s4070_s27, %s3435_s26  ;;  %p3443_p1 = scmp.lt.s32.totalorder %s3441_s22, %s3435_s26 }
 0xd8a   : > { %p3437_p12 = pnand %p3436_p11, %p3655_p5  ;;  %p3444_p2 = por %p3443_p1, %p3442_p0 }
 0xd8c   : > { %p3438_p13 = pneg %p3437_p12 }
 0xd8e   : > { %p3445_p3 = pnand %p3444_p2, %p3438_p13 }
 0xdf5   : > { %v2468_v8 = vpop.permute.xlu0 %2467 }
 0xdf9   : > { %v2472_v12 = vpop.permute.xlu0 %2471 }
 0xe0e   : > { %v2384_v1 = vpop.xlane.xlu1 %2383 }
 0xe0f   : > { %3425 = vrcp.f32 %v2384_v1 }
 0xe10   : > { %3427 = vrcp.f32 %v1865_v7  ;;  %v2954_v7 = vld [vmem:[%s4129_s18] ss:$0 sm:$0xff] }
 0xe19   : > { %v3426_v2 = vpop.eup %3425 }
 0xe1a   : > { %v3428_v9 = vpop.eup %3427 }
 0xe1b   : > { %v1946_v13 = vmul.f32 %v3428_v9, %v3947_v10 }
 0xe1d   : > { %v2478_v14 = vsel %vm815_vm3, %v1946_v13, %v2468_v8 }
 0xe1e   : > { %v2479_v18 = vsel %vm652_vm1, %v2478_v14, %v2472_v12 }
 0xe53   : > { %v2460_v3 = vpop.f32.mrb[18].mxu1 }
 0xe54   : > { %v2465_v4 = vmul.f32 %v3426_v2, %v2460_v3  ;;  %v3180_v6 = vpop.f32.mrb[19].mxu1 }
 0xe56   : > { %2475 = vrot.lane.b32.xlu0 %v2465_v4, %s4180_s23  ;;  %s4068_s23 = scalar_lea.hbm %s4130_s19, %s2957_s24 }
 0xec8   : > { %v2476_v21 = vpop.permute.xlu0 %2475 }
 0xec9   : > { %v2480_v22 = vsel %vm1490_vm4, %v2479_v18, %v2476_v21 }
 0xeca   : > { %3190 = vmatmul.mubr.msk.f32.vlgmr.msra.gmra.mrb[20].mxu1 %vm738_vm2, %v2480_v22 }
 0xecb   : > { %3219 = vmatprep.mubr.msk.f32.mxu1 %vm3500_vm0, %v3499_v5  ;;  %3294 = vmatpush3.bf16.msra.mxu1 %v3293_v48 }
 0xecc   : > { %3295 = vmatprep.subr.bf16.mxu1 %v3501_v11 }
 0xf9d   : > { %v2561_v24 = vpop.f32.mrb[20].mxu1 }
 0xf9e   : > { %v2562_v25 = vadd.f32 %v2950_v23, %v2561_v24  ;;  %v3191_v28 = vpop.f32.mrb[21].mxu1 }
 0xfa0   : > { %v2565_v10 = vadd.f32 %v2562_v25, %v3880_v20  ;;  %v2586_v20 = vld [vmem:[%s4126_s15 + $0x8] sm:$0xff] }
 0xfa1   : > { %v3287_v38 = vpack.c.bf16 %v2586_v20, %v2585_v37 }
 0xfa2   : > { %v2566_v29 = vsel %vm738_vm2, %v2565_v10, 0.0 }
 0xfa3   : > { %2567 = vadd.xlane.f32.xlu0 %v2566_v29  ;;  %3288 = vmatpush3.bf16.msra.mxu0 %v3287_v38  ;;  %v648_v29 = vsub.s32 1, %v3822_v49 }
 0xfa4   : > { %3289 = vmatprep.subr.bf16.mxu0 %v3501_v11 }
 0xfa7   : > { %3291 = vmatpush3.bf16.msra.mxu0 %v3290_v41 }
0x1030   : > { %v2568_v30 = vpop.xlane.xlu0 %2567 }
0x1031   : > { %v2569_v31 = vmul.f32 0.03125, %v2568_v30  ;;  %v649_v30 = vrot.slane %v3830_v51, %v648_v29 }
0x1033   : > { %v2570_v32 = vsub.f32 %v2565_v10, %v2569_v31  ;;  %v725_v31 = vadd.f32 %v3719_v17, %v649_v30 }
0x1035   : > { %v2571_v33 = vmul.f32 %v2570_v32, %v2570_v32 }
0x1037   : > { %v2572_v34 = vsel %vm738_vm2, %v2571_v33, 0.0 }
0x1038   : > { %2573 = vadd.xlane.f32.xlu1 %v2572_v34 }
0x10c5   : > { %v2574_v5 = vpop.xlane.xlu1 %2573 }
0x10c6   : > { %v2575_v35 = vmul.f32 0.03125, %v2574_v5 }
0x10c8   : > { %v2576_v36 = vadd.f32 1e-05, %v2575_v35 }
0x10ca   : > { %3429 = vrsqrt.f32 %v2576_v36 }
0x10d4   : > { %v3430_v42 = vpop.eup %3429 }
0x10d5   : > { %v2578_v43 = vmul.f32 %v3430_v42, %v2570_v32  ;;  %v2798_v32 = vrot.slane %v725_v31, %v3825_v50 }
0x10d7   : > { %2580 = vrot.lane.b32.xlu1 %v2578_v43, %s4181_s4 }
0x1149   : > { %v2581_v44 = vpop.permute.xlu1 %2580 }
0x114a   : > { %v2583_v26 = vmul.f32 %v2581_v44, %v3836_v15  ;;  %v2682_v15 = vld [vmem:[%s4128_s17 + $0x10] sm:$0xff] }
0x114c   : > { %v2584_v45 = vadd.f32 %v2583_v26, %v3877_v19  ;;  %v2683_v19 = vld [vmem:[%s4128_s17 + $0x18] sm:$0xff] }
0x114d   : > { %v3296_v52 = vpack.c.bf16 %v2683_v19, %v2682_v15 }
0x114e   : > { %2597 = vrot.lane.b32.xlu1 %v2584_v45, %s4181_s4 }
0x114f   : > { %3297 = vmatpush3.bf16.msra.mxu1 %v3296_v52 }
0x1150   : > { %3298 = vmatprep.subr.bf16.mxu1 %v3501_v11 }
0x1153   : > { %3300 = vmatpush3.bf16.msra.mxu1 %v3299_v55 }
0x1154   : > { %3301 = vmatprep.subr.bf16.mxu1 %v3501_v11 }
0x1157   : > { %3303 = vmatpush3.bf16.msra.mxu1 %v3302_v16 }
0x11c0   : > { %v2598_v46 = vpop.permute.xlu1 %2597 }
0x11c1   : > { %3201 = vmatmul.mubr.msk.f32.vlgmr.msra.gmra.mrb[22].mxu0 %vm738_vm2, %v2598_v46 }
0x1294   : > { %v2667_v59 = vpop.f32.mrb[22].mxu0 }
0x1295   : > { %v2668_v60 = vadd.f32 %v2952_v58, %v2667_v59  ;;  %v3202_v61 = vpop.f32.mrb[23].mxu0 }
0x1297   : > { %v2671_v62 = vmul.f32 %v2668_v60, %v2668_v60 }
0x1299   : > { %v2672_v63 = vmul.f32 %v2671_v62, %v2668_v60 }
0x129b   : > { %v2673_v11 = vmul.f32 0.044715, %v2672_v63 }
0x129d   : > { %v2674_v0 = vadd.f32 %v2673_v11, %v2668_v60 }
0x129f   : > { %v2675_v1 = vmul.f32 0.7978846, %v2674_v0 }
0x12a1   : > { %3431 = vtanh.f32 %v2675_v1 }
0x12ab   : > { %v3432_v2 = vpop.eup %3431 }
0x12ac   : > { %v2677_v3 = vadd.f32 1.0, %v3432_v2 }
0x12ae   : > { %v2678_v4 = vmul.f32 0.5, %v2677_v3 }
0x12b0   : > { %v2679_v6 = vmul.f32 %v2678_v4, %v2668_v60 }
0x12b2   : > { %3220 = vmatmul.mubr.msk.f32.vlgmr.msra.gmra.mrb[22].mxu1 %vm2695_vm6, %v2679_v6 }
0x1385   : > { %v2765_v8 = vpop.f32.mrb[22].mxu1 }
0x1386   : > { %v2766_v9 = vadd.f32 %v2954_v7, %v2765_v8  ;;  %v3221_v12 = vpop.f32.mrb[23].mxu1 }
0x1388   : > { %2770 = vrot.lane.b32.xlu1 %v2766_v9, %s4181_s4 }
0x13fa   : > { %v2771_v13 = vpop.permute.xlu1 %2770 }
0x13fb   : > { %v2773_v14 = vadd.f32 %v2771_v13, %v2584_v45 }
0x13fd   : > { %2775 = vrot.lane.b32.xlu1 %v2773_v14, %s4181_s4 }
0x146f   : > { %v2776_v18 = vpop.permute.xlu1 %2775 }
0x1470   : > { %v2778_v21 = vsel %vm738_vm2, %v2776_v18, 0.0 }
0x1471   : > { %2779 = vadd.xlane.f32.xlu0 %v2778_v21 }
0x14fe   : > { %v2780_v22 = vpop.xlane.xlu0 %2779 }
0x14ff   : > { %v2781_v23 = vmul.f32 0.03125, %v2780_v22 }
0x1501   : > { %v2782_v24 = vsub.f32 %v2773_v14, %v2781_v23 }
0x1503   : > { %v2783_v25 = vmul.f32 %v2782_v24, %v2782_v24 }
0x1505   : > { %2785 = vrot.lane.b32.xlu1 %v2783_v25, %s4181_s4 }
0x1577   : > { %v2786_v28 = vpop.permute.xlu1 %2785 }
0x1578   : > { %v2788_v10 = vsel %vm738_vm2, %v2786_v28, 0.0 }
0x1579   : > { %2789 = vadd.xlane.f32.xlu0 %v2788_v10 }
0x158f   : > { %2805 = vrot.lane.b32.xlu0 %v2798_v32, %s4174_s2 }
0x1606   : > { %v2790_v33 = vpop.xlane.xlu0 %2789 }
0x1607   : > { %v2791_v34 = vmul.f32 0.03125, %v2790_v33 }
0x1609   : > { %v2792_v5 = vadd.f32 1e-05, %v2791_v34 }
0x160a   : > { %v2806_v51 = vpop.permute.xlu0 %2805 }
0x160b   : > { %3433 = vrsqrt.f32 %v2792_v5 }
0x1615   : > { %v3434_v35 = vpop.eup %3433 }
0x1616   : > { %v2794_v36 = vmul.f32 %v3434_v35, %v2782_v24 }
0x1618   : > { %2800 = vrot.lane.b32.xlu1 %v2794_v36, %s4181_s4  ;;  %s2811_s4 = scalar_lea.sflag [#allocation3], %s617_s25 }
0x168a   : > { %v2801_v49 = vpop.permute.xlu1 %2800 }
0x168b   : > { %v2803_v17 = vmul.f32 %v2801_v49, %v2798_v32 }
0x168d   : > { %v2808_v50 = vadd.f32 %v2806_v51, %v2803_v17 }
0x168f   : > { %2809 = vst.msk [vmem:[%s619_s28] sm:$0xff] %vm738_vm2, %v2808_v50 }
0x1690   : > { %3448 = shalt.err (!%p3445_p3)
}
0x1691   : > { %s3449_s25 = scalar_lea.hbm %s4068_s23, 128  ;;  %s3453_s20 = scalar_lea.hbm %s4130_s19, 256 }
0x1692   : > { %p3450_p4 = scmp.ne.s32.totalorder %s4068_s23, %s3449_s25  ;;  %p3454_p9 = scmp.lt.u32.totalorder %s4068_s23, %s4130_s19 }
0x1693   : > { %p3455_p10 = scmp.lt.u32.totalorder %s3453_s20, %s3449_s25  ;;  %p3457_p12 = scmp.lt.u32.totalorder %s3449_s25, %s4068_s23 }
0x1694   : > { %p3451_p7 = pnand %p3450_p4, %p3655_p5 }
0x1695   : > { %p3456_p11 = por %p3455_p10, %p3454_p9 }
0x1696   : > { %p3452_p8 = pneg %p3451_p7 }
0x1697   : > { %p3458_p13 = por %p3457_p12, %p3456_p11 }
0x1699   : > { %p3459_p0 = pnand %p3458_p13, %p3452_p8 }
0x169b   : > { %3462 = shalt.err (!%p3459_p0)
}
0x169c   : > { %3304 = dma.vmem_to_hbm [thread:$0]  (%p3655_p5), %s4070_s27, 128, %s4068_s23, %s2811_s4  }
0x169d PF: > { %p3310_p1 = scmp.ge.s32.totalorder %s3497_s21, 2  ;;  %s2836_s29 = sand.u32 1, %s3485_s0  }
0x169e   : > { %s2837_s22 = scalar_lea.sflag [#allocation3], %s2836_s29 }
0x169f   : > { %p3307_p2 = pnand %p3310_p1, %p3659_p6 }
0x16a1   : > { %3480 = dma.done.wait (!%p3307_p2), %s2837_s22, 128  }
0x16a2   : > { %3482 = vsyncadd (!%p3307_p2), %s2837_s22, 4294967168  ;;  %s4183_s21 = sld [smem:[#allocation6_spill]]  ;;  %s4184_s25 = sld [smem:[#allocation5_spill]] }
0x16a3   : > { %s4185_s20 = sld [smem:[#allocation7_spill]]  ;;  %s4186_s0 = smov %s3489_s30 }
0x16a8   : > { %p29_p3 = scmp.ge.s32.totalorder %s4183_s21, 4   ;;  %s4187_s30 = smov %s4184_s25 }
0x16aa   :  { %31 = sbr.rel (!%p29_p3) target bundleno = 9 (0x9), region = 137 }
0x16b1   :  { %2842 = vsyncpa [#allocation3], 1 }
0x16b2   :  { %2844 = vsyncpa [#allocation3 + $0x1], 1 }

</bundles_post_ra>
